<compile_context>
chip_gen: v6e
topology: v6e:2x2x1
jax: 0.10.0
libtpu: 0.0.40
codegen_flags: <defaults>
</compile_context>

<pallas_src>
import math
import jax
import jax.numpy as jnp
from jax import lax
from jax.experimental import pallas as pl
from jax.experimental.pallas import tpu as pltpu

# ---------------- model hyper-parameters (small, consistent with module) -----
B = 2          # batch
S = 16         # sequence length
D = 32         # model size ("size" in EncoderLayer)
H = 4          # attention heads
DK = D // H    # per-head dim
DFF = 64       # feed-forward hidden dim
EPS = 1e-6

# rows of the packed (9, D) vector table
_LN1A, _LN1B, _BQ, _BK, _BV, _BO, _LN2A, _LN2B, _BF2 = range(9)


def _layernorm(v, a, b):
    """Torch-style: a * (v - mean) / (std_unbiased + eps) + b, over last dim."""
    mean = jnp.mean(v, axis=-1, keepdims=True)
    var = jnp.sum((v - mean) ** 2, axis=-1, keepdims=True) * (1.0 / (v.shape[-1] - 1))
    inv = pl.reciprocal(jnp.sqrt(var) + EPS, approx=False)
    return a * (v - mean) * inv + b


def encoder_layer_kernel(x_ref, mask_ref, wqkvo_ref, vec_ref,
                         w1_ref, b1_ref, w2_ref, o_ref):
    x = x_ref[...]                 # (B*S, D)
    vecs = vec_ref[...]            # (9, D) packed LN params + biases
    ln1a, ln1b = vecs[_LN1A:_LN1A + 1], vecs[_LN1B:_LN1B + 1]
    bq, bk = vecs[_BQ:_BQ + 1], vecs[_BK:_BK + 1]
    bv, bo = vecs[_BV:_BV + 1], vecs[_BO:_BO + 1]
    ln2a, ln2b = vecs[_LN2A:_LN2A + 1], vecs[_LN2B:_LN2B + 1]
    bf2 = vecs[_BF2:_BF2 + 1]

    # ---- sublayer 0: pre-norm multi-head self-attention + residual ----------
    y = _layernorm(x, ln1a, ln1b)                                   # (B*S, D)
    q = jnp.dot(y, wqkvo_ref[0], preferred_element_type=jnp.float32) + bq
    k = jnp.dot(y, wqkvo_ref[1], preferred_element_type=jnp.float32) + bk
    v = jnp.dot(y, wqkvo_ref[2], preferred_element_type=jnp.float32) + bv
    wo = wqkvo_ref[3]                                               # (D, D)

    # additive key-mask bias, computed once: 0 where attend, -1e9 where masked
    bias_all = (mask_ref[...] - 1.0) * 1e9                          # (B, S)
    scale = 1.0 / math.sqrt(DK)

    attn_blocks = []
    for b in range(B):                       # static loop over batch elements
        rs = slice(b * S, (b + 1) * S)
        qb, kb, vb = q[rs], k[rs], v[rs]                            # (S, D)
        bias = bias_all[b:b + 1, :]                                 # (1, S)
        acc = jnp.zeros((S, D), jnp.float32)
        for h in range(H):                   # static loop over heads
            cs = slice(h * DK, (h + 1) * DK)
            qh, kh, vh = qb[:, cs], kb[:, cs], vb[:, cs]            # (S, DK)
            # contract DK directly (no kh.T transpose)
            scores = lax.dot_general(
                qh, kh, (((1,), (1,)), ((), ())),
                preferred_element_type=jnp.float32) * scale + bias  # (S, S)
            scores = scores - jnp.max(scores, axis=-1, keepdims=True)
            p = jnp.exp(scores)
            p = p * pl.reciprocal(jnp.sum(p, axis=-1, keepdims=True),
                                  approx=False)
            head = jnp.dot(p, vh, preferred_element_type=jnp.float32)   # (S, DK)
            # fold output projection: no lane-axis concat of heads
            acc = acc + jnp.dot(head, wo[cs, :],
                                preferred_element_type=jnp.float32)     # (S, D)
        attn_blocks.append(acc)
    attn = jnp.concatenate(attn_blocks, axis=0) + bo                # (B*S, D)

    x1 = x + attn

    # ---- sublayer 1: pre-norm position-wise feed-forward + residual ---------
    y2 = _layernorm(x1, ln2a, ln2b)
    hdn = jnp.dot(y2, w1_ref[...], preferred_element_type=jnp.float32) + b1_ref[...]
    hdn = jnp.maximum(hdn, 0.0)
    ff = jnp.dot(hdn, w2_ref[...], preferred_element_type=jnp.float32) + bf2

    o_ref[...] = x1 + ff


def _pack_params(params):
    (ln1a, ln1b, wq, bq, wk, bk, wv, bv, wo, bo,
     ln2a, ln2b, w1, bf1, w2, bf2) = params
    w_qkvo = jnp.stack([wq, wk, wv, wo], axis=0)                    # (4, D, D)
    vec_d = jnp.concatenate(
        [ln1a, ln1b, bq, bk, bv, bo, ln2a, ln2b, bf2], axis=0)      # (9, D)
    return w_qkvo, vec_d, w1, bf1, w2


def encoder_layer(x, mask, params):
    w_qkvo, vec_d, w1, bf1, w2 = _pack_params(params)
    x2 = x.reshape(B * S, D)          # flatten batch into rows outside kernel
    mask2 = mask.reshape(B, S)
    vmem = pl.BlockSpec(memory_space=pltpu.MemorySpace.VMEM)
    out2 = pl.pallas_call(
        encoder_layer_kernel,
        out_shape=jax.ShapeDtypeStruct((B * S, D), jnp.float32),
        in_specs=[vmem] * 7,
        out_specs=vmem,
    )(x2, mask2, w_qkvo, vec_d, w1, bf1, w2)
    return out2.reshape(B, S, D)


def encoder_layer_ref(x, mask, params):
    """Pure-JAX reference mirroring the PyTorch forward (eval mode)."""
    (ln1a, ln1b, wq, bq, wk, bk, wv, bv, wo, bo,
     ln2a, ln2b, w1, bf1, w2, bf2) = params

    def ln(v, a, b):
        mean = jnp.mean(v, axis=-1, keepdims=True)
        var = jnp.sum((v - mean) ** 2, axis=-1, keepdims=True) / (v.shape[-1] - 1)
        return a[0] * (v - mean) / (jnp.sqrt(var) + EPS) + b[0]

    y = ln(x, ln1a, ln1b)
    q = y @ wq + bq[0]
    k = y @ wk + bk[0]
    v = y @ wv + bv[0]
    qh = q.reshape(B, S, H, DK).transpose(0, 2, 1, 3)
    kh = k.reshape(B, S, H, DK).transpose(0, 2, 1, 3)
    vh = v.reshape(B, S, H, DK).transpose(0, 2, 1, 3)
    scores = jnp.einsum("bhqd,bhkd->bhqk", qh, kh) / math.sqrt(DK)
    scores = jnp.where(mask[:, None, :, :] == 0, -1e9, scores)
    p = jax.nn.softmax(scores, axis=-1)
    attn = jnp.einsum("bhqk,bhkd->bhqd", p, vh).transpose(0, 2, 1, 3).reshape(B, S, D)
    attn = attn @ wo + bo[0]
    x1 = x + attn
    y2 = ln(x1, ln2a, ln2b)
    ff = jnp.maximum(y2 @ w1 + bf1[0], 0.0) @ w2 + bf2[0]
    return x1 + ff


def make_params(key):
    ks = jax.random.split(key, 8)
    scale = 0.1
    params = (
        jnp.ones((1, D), jnp.float32),                                  # ln1 a_2
        jnp.zeros((1, D), jnp.float32),                                 # ln1 b_2
        scale * jax.random.normal(ks[0], (D, D), jnp.float32),          # Wq
        scale * jax.random.normal(ks[1], (1, D), jnp.float32),          # bq
        scale * jax.random.normal(ks[2], (D, D), jnp.float32),          # Wk
        jnp.zeros((1, D), jnp.float32),                                 # bk
        scale * jax.random.normal(ks[3], (D, D), jnp.float32),          # Wv
        jnp.zeros((1, D), jnp.float32),                                 # bv
        scale * jax.random.normal(ks[4], (D, D), jnp.float32),          # Wo
        jnp.zeros((1, D), jnp.float32),                                 # bo
        jnp.ones((1, D), jnp.float32),                                  # ln2 a_2
        jnp.zeros((1, D), jnp.float32),                                 # ln2 b_2
        scale * jax.random.normal(ks[5], (D, DFF), jnp.float32),        # W1
        scale * jax.random.normal(ks[6], (1, DFF), jnp.float32),        # b1
        scale * jax.random.normal(ks[7], (DFF, D), jnp.float32),        # W2
        jnp.zeros((1, D), jnp.float32),                                 # b2
    )
    return params


if __name__ == "__main__":
    key = jax.random.PRNGKey(0)
    kx, kp = jax.random.split(key)
    x = jax.random.normal(kx, (B, S, D), jnp.float32)
    # mask: 1 = attend, 0 = masked; mask out the last two key positions.
    mask = jnp.ones((B, 1, S), jnp.float32).at[:, :, S - 2:].set(0.0)
    params = make_params(kp)

    out = encoder_layer(x, mask, params)
    out = jax.block_until_ready(out)

    ref = encoder_layer_ref(x, mask, params)
    assert out.shape == (B, S, D)
    assert jnp.allclose(out, ref, atol=1e-4, rtol=1e-4), (
        float(jnp.max(jnp.abs(out - ref))))

    print("KERNEL_OK")
</pallas_src>

<mosaic_0001>
module attributes {stable_mosaic.version = 11 : i64} {
  func.func @encoder_layer_kernel(%arg0: memref<32x32xf32, #tpu.memory_space<vmem>>, %arg1: memref<2x16xf32, #tpu.memory_space<vmem>>, %arg2: memref<4x32x32xf32, #tpu.memory_space<vmem>>, %arg3: memref<9x32xf32, #tpu.memory_space<vmem>>, %arg4: memref<32x64xf32, #tpu.memory_space<vmem>>, %arg5: memref<1x64xf32, #tpu.memory_space<vmem>>, %arg6: memref<64x32xf32, #tpu.memory_space<vmem>>, %arg7: memref<32x32xf32, #tpu.memory_space<vmem>>) attributes {dimension_semantics = [], scalar_prefetch = 0 : i64, scratch_operands = 0 : i64, tpu.core_type = #tpu.core_type<tc>} {
    %c0 = arith.constant 0 : index
    %c0_0 = arith.constant 0 : index
    %0 = vector.load %arg0[%c0, %c0_0] : memref<32x32xf32, #tpu.memory_space<vmem>>, vector<32x32xf32>
    %c0_1 = arith.constant 0 : index
    %c0_2 = arith.constant 0 : index
    %1 = vector.load %arg3[%c0_1, %c0_2] : memref<9x32xf32, #tpu.memory_space<vmem>>, vector<9x32xf32>
    %2 = vector.extract_strided_slice %1 {offsets = [0, 0], sizes = [1, 32], strides = [1, 1]} : vector<9x32xf32> to vector<1x32xf32>
    %3 = vector.extract_strided_slice %1 {offsets = [1, 0], sizes = [1, 32], strides = [1, 1]} : vector<9x32xf32> to vector<1x32xf32>
    %4 = vector.extract_strided_slice %1 {offsets = [2, 0], sizes = [1, 32], strides = [1, 1]} : vector<9x32xf32> to vector<1x32xf32>
    %5 = vector.extract_strided_slice %1 {offsets = [3, 0], sizes = [1, 32], strides = [1, 1]} : vector<9x32xf32> to vector<1x32xf32>
    %6 = vector.extract_strided_slice %1 {offsets = [4, 0], sizes = [1, 32], strides = [1, 1]} : vector<9x32xf32> to vector<1x32xf32>
    %7 = vector.extract_strided_slice %1 {offsets = [5, 0], sizes = [1, 32], strides = [1, 1]} : vector<9x32xf32> to vector<1x32xf32>
    %8 = vector.extract_strided_slice %1 {offsets = [6, 0], sizes = [1, 32], strides = [1, 1]} : vector<9x32xf32> to vector<1x32xf32>
    %9 = vector.extract_strided_slice %1 {offsets = [7, 0], sizes = [1, 32], strides = [1, 1]} : vector<9x32xf32> to vector<1x32xf32>
    %10 = vector.extract_strided_slice %1 {offsets = [8, 0], sizes = [1, 32], strides = [1, 1]} : vector<9x32xf32> to vector<1x32xf32>
    %cst = arith.constant dense<0.000000e+00> : vector<32xf32>
    %11 = vector.multi_reduction <add>, %0, %cst [1] : vector<32x32xf32> to vector<32xf32>
    %12 = vector.shape_cast %11 : vector<32xf32> to vector<32x1xf32>
    %cst_3 = arith.constant 3.200000e+01 : f32
    %13 = vector.broadcast %cst_3 : f32 to vector<32x1xf32>
    %14 = arith.divf %12, %13 : vector<32x1xf32>
    %15 = vector.broadcast %14 : vector<32x1xf32> to vector<32x32xf32>
    %16 = arith.subf %0, %15 : vector<32x32xf32>
    %17 = arith.mulf %16, %16 : vector<32x32xf32>
    %cst_4 = arith.constant dense<0.000000e+00> : vector<32xf32>
    %18 = vector.multi_reduction <add>, %17, %cst_4 [1] : vector<32x32xf32> to vector<32xf32>
    %19 = vector.shape_cast %18 : vector<32xf32> to vector<32x1xf32>
    %cst_5 = arith.constant 0.0322580636 : f32
    %20 = vector.broadcast %cst_5 : f32 to vector<32x1xf32>
    %21 = arith.mulf %19, %20 : vector<32x1xf32>
    %22 = math.sqrt %21 : vector<32x1xf32>
    %cst_6 = arith.constant 9.99999997E-7 : f32
    %23 = vector.broadcast %cst_6 : f32 to vector<32x1xf32>
    %24 = arith.addf %22, %23 : vector<32x1xf32>
    %25 = tpu.reciprocal %24 : vector<32x1xf32> -> vector<32x1xf32>
    %26 = vector.broadcast %14 : vector<32x1xf32> to vector<32x32xf32>
    %27 = arith.subf %0, %26 : vector<32x32xf32>
    %28 = vector.broadcast %2 : vector<1x32xf32> to vector<32x32xf32>
    %29 = arith.mulf %28, %27 : vector<32x32xf32>
    %30 = vector.broadcast %25 : vector<32x1xf32> to vector<32x32xf32>
    %31 = arith.mulf %29, %30 : vector<32x32xf32>
    %32 = vector.broadcast %3 : vector<1x32xf32> to vector<32x32xf32>
    %33 = arith.addf %31, %32 : vector<32x32xf32>
    %c0_7 = arith.constant 0 : index
    %c0_8 = arith.constant 0 : index
    %c0_9 = arith.constant 0 : index
    %34 = vector.load %arg2[%c0_7, %c0_8, %c0_9] : memref<4x32x32xf32, #tpu.memory_space<vmem>>, vector<1x32x32xf32>
    %35 = vector.shape_cast %34 : vector<1x32x32xf32> to vector<32x32xf32>
    %cst_10 = arith.constant dense<0.000000e+00> : vector<32x32xf32>
    %36 = tpu.matmul %33, %35, %cst_10 {dimension_numbers = #tpu.dot_dimension_numbers<[1], [0], [0], [1], [0, 0, 1, 1], [], []>} : vector<32x32xf32>, vector<32x32xf32>, vector<32x32xf32> -> vector<32x32xf32>
    %37 = vector.broadcast %4 : vector<1x32xf32> to vector<32x32xf32>
    %38 = arith.addf %36, %37 : vector<32x32xf32>
    %c1 = arith.constant 1 : index
    %c0_11 = arith.constant 0 : index
    %c0_12 = arith.constant 0 : index
    %39 = vector.load %arg2[%c1, %c0_11, %c0_12] : memref<4x32x32xf32, #tpu.memory_space<vmem>>, vector<1x32x32xf32>
    %40 = vector.shape_cast %39 : vector<1x32x32xf32> to vector<32x32xf32>
    %cst_13 = arith.constant dense<0.000000e+00> : vector<32x32xf32>
    %41 = tpu.matmul %33, %40, %cst_13 {dimension_numbers = #tpu.dot_dimension_numbers<[1], [0], [0], [1], [0, 0, 1, 1], [], []>} : vector<32x32xf32>, vector<32x32xf32>, vector<32x32xf32> -> vector<32x32xf32>
    %42 = vector.broadcast %5 : vector<1x32xf32> to vector<32x32xf32>
    %43 = arith.addf %41, %42 : vector<32x32xf32>
    %c2 = arith.constant 2 : index
    %c0_14 = arith.constant 0 : index
    %c0_15 = arith.constant 0 : index
    %44 = vector.load %arg2[%c2, %c0_14, %c0_15] : memref<4x32x32xf32, #tpu.memory_space<vmem>>, vector<1x32x32xf32>
    %45 = vector.shape_cast %44 : vector<1x32x32xf32> to vector<32x32xf32>
    %cst_16 = arith.constant dense<0.000000e+00> : vector<32x32xf32>
    %46 = tpu.matmul %33, %45, %cst_16 {dimension_numbers = #tpu.dot_dimension_numbers<[1], [0], [0], [1], [0, 0, 1, 1], [], []>} : vector<32x32xf32>, vector<32x32xf32>, vector<32x32xf32> -> vector<32x32xf32>
    %47 = vector.broadcast %6 : vector<1x32xf32> to vector<32x32xf32>
    %48 = arith.addf %46, %47 : vector<32x32xf32>
    %c3 = arith.constant 3 : index
    %c0_17 = arith.constant 0 : index
    %c0_18 = arith.constant 0 : index
    %49 = vector.load %arg2[%c3, %c0_17, %c0_18] : memref<4x32x32xf32, #tpu.memory_space<vmem>>, vector<1x32x32xf32>
    %50 = vector.shape_cast %49 : vector<1x32x32xf32> to vector<32x32xf32>
    %c0_19 = arith.constant 0 : index
    %c0_20 = arith.constant 0 : index
    %51 = vector.load %arg1[%c0_19, %c0_20] : memref<2x16xf32, #tpu.memory_space<vmem>>, vector<2x16xf32>
    %cst_21 = arith.constant 1.000000e+00 : f32
    %52 = vector.broadcast %cst_21 : f32 to vector<2x16xf32>
    %53 = arith.subf %51, %52 : vector<2x16xf32>
    %cst_22 = arith.constant 1.000000e+09 : f32
    %54 = vector.broadcast %cst_22 : f32 to vector<2x16xf32>
    %55 = arith.mulf %53, %54 : vector<2x16xf32>
    %56 = vector.extract_strided_slice %38 {offsets = [0, 0], sizes = [16, 32], strides = [1, 1]} : vector<32x32xf32> to vector<16x32xf32>
    %57 = vector.extract_strided_slice %43 {offsets = [0, 0], sizes = [16, 32], strides = [1, 1]} : vector<32x32xf32> to vector<16x32xf32>
    %58 = vector.extract_strided_slice %48 {offsets = [0, 0], sizes = [16, 32], strides = [1, 1]} : vector<32x32xf32> to vector<16x32xf32>
    %59 = vector.extract_strided_slice %55 {offsets = [0, 0], sizes = [1, 16], strides = [1, 1]} : vector<2x16xf32> to vector<1x16xf32>
    %cst_23 = arith.constant 0.000000e+00 : f32
    %60 = vector.broadcast %cst_23 : f32 to vector<16x32xf32>
    %61 = vector.extract_strided_slice %56 {offsets = [0, 0], sizes = [16, 8], strides = [1, 1]} : vector<16x32xf32> to vector<16x8xf32>
    %62 = vector.extract_strided_slice %57 {offsets = [0, 0], sizes = [16, 8], strides = [1, 1]} : vector<16x32xf32> to vector<16x8xf32>
    %63 = vector.extract_strided_slice %58 {offsets = [0, 0], sizes = [16, 8], strides = [1, 1]} : vector<16x32xf32> to vector<16x8xf32>
    %cst_24 = arith.constant dense<0.000000e+00> : vector<16x16xf32>
    %64 = tpu.matmul %61, %62, %cst_24 {dimension_numbers = #tpu.dot_dimension_numbers<[1], [1], [0], [0], [0, 0, 1, 0], [], []>} : vector<16x8xf32>, vector<16x8xf32>, vector<16x16xf32> -> vector<16x16xf32>
    %cst_25 = arith.constant 0.353553385 : f32
    %65 = vector.broadcast %cst_25 : f32 to vector<16x16xf32>
    %66 = arith.mulf %64, %65 : vector<16x16xf32>
    %67 = vector.broadcast %59 : vector<1x16xf32> to vector<16x16xf32>
    %68 = arith.addf %66, %67 : vector<16x16xf32>
    %cst_26 = arith.constant dense<0xFF800000> : vector<16xf32>
    %69 = vector.multi_reduction <maximumf>, %68, %cst_26 [1] : vector<16x16xf32> to vector<16xf32>
    %70 = vector.shape_cast %69 : vector<16xf32> to vector<16x1xf32>
    %71 = vector.broadcast %70 : vector<16x1xf32> to vector<16x16xf32>
    %72 = arith.subf %68, %71 : vector<16x16xf32>
    %73 = math.exp %72 : vector<16x16xf32>
    %cst_27 = arith.constant dense<0.000000e+00> : vector<16xf32>
    %74 = vector.multi_reduction <add>, %73, %cst_27 [1] : vector<16x16xf32> to vector<16xf32>
    %75 = vector.shape_cast %74 : vector<16xf32> to vector<16x1xf32>
    %76 = tpu.reciprocal %75 : vector<16x1xf32> -> vector<16x1xf32>
    %77 = vector.broadcast %76 : vector<16x1xf32> to vector<16x16xf32>
    %78 = arith.mulf %73, %77 : vector<16x16xf32>
    %cst_28 = arith.constant dense<0.000000e+00> : vector<16x8xf32>
    %79 = tpu.matmul %78, %63, %cst_28 {dimension_numbers = #tpu.dot_dimension_numbers<[1], [0], [0], [1], [0, 0, 1, 1], [], []>} : vector<16x16xf32>, vector<16x8xf32>, vector<16x8xf32> -> vector<16x8xf32>
    %80 = vector.extract_strided_slice %50 {offsets = [0, 0], sizes = [8, 32], strides = [1, 1]} : vector<32x32xf32> to vector<8x32xf32>
    %cst_29 = arith.constant dense<0.000000e+00> : vector<16x32xf32>
    %81 = tpu.matmul %79, %80, %cst_29 {dimension_numbers = #tpu.dot_dimension_numbers<[1], [0], [0], [1], [0, 0, 1, 1], [], []>} : vector<16x8xf32>, vector<8x32xf32>, vector<16x32xf32> -> vector<16x32xf32>
    %82 = arith.addf %60, %81 : vector<16x32xf32>
    %83 = vector.extract_strided_slice %56 {offsets = [0, 8], sizes = [16, 8], strides = [1, 1]} : vector<16x32xf32> to vector<16x8xf32>
    %84 = vector.extract_strided_slice %57 {offsets = [0, 8], sizes = [16, 8], strides = [1, 1]} : vector<16x32xf32> to vector<16x8xf32>
    %85 = vector.extract_strided_slice %58 {offsets = [0, 8], sizes = [16, 8], strides = [1, 1]} : vector<16x32xf32> to vector<16x8xf32>
    %cst_30 = arith.constant dense<0.000000e+00> : vector<16x16xf32>
    %86 = tpu.matmul %83, %84, %cst_30 {dimension_numbers = #tpu.dot_dimension_numbers<[1], [1], [0], [0], [0, 0, 1, 0], [], []>} : vector<16x8xf32>, vector<16x8xf32>, vector<16x16xf32> -> vector<16x16xf32>
    %cst_31 = arith.constant 0.353553385 : f32
    %87 = vector.broadcast %cst_31 : f32 to vector<16x16xf32>
    %88 = arith.mulf %86, %87 : vector<16x16xf32>
    %89 = vector.broadcast %59 : vector<1x16xf32> to vector<16x16xf32>
    %90 = arith.addf %88, %89 : vector<16x16xf32>
    %cst_32 = arith.constant dense<0xFF800000> : vector<16xf32>
    %91 = vector.multi_reduction <maximumf>, %90, %cst_32 [1] : vector<16x16xf32> to vector<16xf32>
    %92 = vector.shape_cast %91 : vector<16xf32> to vector<16x1xf32>
    %93 = vector.broadcast %92 : vector<16x1xf32> to vector<16x16xf32>
    %94 = arith.subf %90, %93 : vector<16x16xf32>
    %95 = math.exp %94 : vector<16x16xf32>
    %cst_33 = arith.constant dense<0.000000e+00> : vector<16xf32>
    %96 = vector.multi_reduction <add>, %95, %cst_33 [1] : vector<16x16xf32> to vector<16xf32>
    %97 = vector.shape_cast %96 : vector<16xf32> to vector<16x1xf32>
    %98 = tpu.reciprocal %97 : vector<16x1xf32> -> vector<16x1xf32>
    %99 = vector.broadcast %98 : vector<16x1xf32> to vector<16x16xf32>
    %100 = arith.mulf %95, %99 : vector<16x16xf32>
    %cst_34 = arith.constant dense<0.000000e+00> : vector<16x8xf32>
    %101 = tpu.matmul %100, %85, %cst_34 {dimension_numbers = #tpu.dot_dimension_numbers<[1], [0], [0], [1], [0, 0, 1, 1], [], []>} : vector<16x16xf32>, vector<16x8xf32>, vector<16x8xf32> -> vector<16x8xf32>
    %102 = vector.extract_strided_slice %50 {offsets = [8, 0], sizes = [8, 32], strides = [1, 1]} : vector<32x32xf32> to vector<8x32xf32>
    %cst_35 = arith.constant dense<0.000000e+00> : vector<16x32xf32>
    %103 = tpu.matmul %101, %102, %cst_35 {dimension_numbers = #tpu.dot_dimension_numbers<[1], [0], [0], [1], [0, 0, 1, 1], [], []>} : vector<16x8xf32>, vector<8x32xf32>, vector<16x32xf32> -> vector<16x32xf32>
    %104 = arith.addf %82, %103 : vector<16x32xf32>
    %105 = vector.extract_strided_slice %56 {offsets = [0, 16], sizes = [16, 8], strides = [1, 1]} : vector<16x32xf32> to vector<16x8xf32>
    %106 = vector.extract_strided_slice %57 {offsets = [0, 16], sizes = [16, 8], strides = [1, 1]} : vector<16x32xf32> to vector<16x8xf32>
    %107 = vector.extract_strided_slice %58 {offsets = [0, 16], sizes = [16, 8], strides = [1, 1]} : vector<16x32xf32> to vector<16x8xf32>
    %cst_36 = arith.constant dense<0.000000e+00> : vector<16x16xf32>
    %108 = tpu.matmul %105, %106, %cst_36 {dimension_numbers = #tpu.dot_dimension_numbers<[1], [1], [0], [0], [0, 0, 1, 0], [], []>} : vector<16x8xf32>, vector<16x8xf32>, vector<16x16xf32> -> vector<16x16xf32>
    %cst_37 = arith.constant 0.353553385 : f32
    %109 = vector.broadcast %cst_37 : f32 to vector<16x16xf32>
    %110 = arith.mulf %108, %109 : vector<16x16xf32>
    %111 = vector.broadcast %59 : vector<1x16xf32> to vector<16x16xf32>
    %112 = arith.addf %110, %111 : vector<16x16xf32>
    %cst_38 = arith.constant dense<0xFF800000> : vector<16xf32>
    %113 = vector.multi_reduction <maximumf>, %112, %cst_38 [1] : vector<16x16xf32> to vector<16xf32>
    %114 = vector.shape_cast %113 : vector<16xf32> to vector<16x1xf32>
    %115 = vector.broadcast %114 : vector<16x1xf32> to vector<16x16xf32>
    %116 = arith.subf %112, %115 : vector<16x16xf32>
    %117 = math.exp %116 : vector<16x16xf32>
    %cst_39 = arith.constant dense<0.000000e+00> : vector<16xf32>
    %118 = vector.multi_reduction <add>, %117, %cst_39 [1] : vector<16x16xf32> to vector<16xf32>
    %119 = vector.shape_cast %118 : vector<16xf32> to vector<16x1xf32>
    %120 = tpu.reciprocal %119 : vector<16x1xf32> -> vector<16x1xf32>
    %121 = vector.broadcast %120 : vector<16x1xf32> to vector<16x16xf32>
    %122 = arith.mulf %117, %121 : vector<16x16xf32>
    %cst_40 = arith.constant dense<0.000000e+00> : vector<16x8xf32>
    %123 = tpu.matmul %122, %107, %cst_40 {dimension_numbers = #tpu.dot_dimension_numbers<[1], [0], [0], [1], [0, 0, 1, 1], [], []>} : vector<16x16xf32>, vector<16x8xf32>, vector<16x8xf32> -> vector<16x8xf32>
    %124 = vector.extract_strided_slice %50 {offsets = [16, 0], sizes = [8, 32], strides = [1, 1]} : vector<32x32xf32> to vector<8x32xf32>
    %cst_41 = arith.constant dense<0.000000e+00> : vector<16x32xf32>
    %125 = tpu.matmul %123, %124, %cst_41 {dimension_numbers = #tpu.dot_dimension_numbers<[1], [0], [0], [1], [0, 0, 1, 1], [], []>} : vector<16x8xf32>, vector<8x32xf32>, vector<16x32xf32> -> vector<16x32xf32>
    %126 = arith.addf %104, %125 : vector<16x32xf32>
    %127 = vector.extract_strided_slice %56 {offsets = [0, 24], sizes = [16, 8], strides = [1, 1]} : vector<16x32xf32> to vector<16x8xf32>
    %128 = vector.extract_strided_slice %57 {offsets = [0, 24], sizes = [16, 8], strides = [1, 1]} : vector<16x32xf32> to vector<16x8xf32>
    %129 = vector.extract_strided_slice %58 {offsets = [0, 24], sizes = [16, 8], strides = [1, 1]} : vector<16x32xf32> to vector<16x8xf32>
    %cst_42 = arith.constant dense<0.000000e+00> : vector<16x16xf32>
    %130 = tpu.matmul %127, %128, %cst_42 {dimension_numbers = #tpu.dot_dimension_numbers<[1], [1], [0], [0], [0, 0, 1, 0], [], []>} : vector<16x8xf32>, vector<16x8xf32>, vector<16x16xf32> -> vector<16x16xf32>
    %cst_43 = arith.constant 0.353553385 : f32
    %131 = vector.broadcast %cst_43 : f32 to vector<16x16xf32>
    %132 = arith.mulf %130, %131 : vector<16x16xf32>
    %133 = vector.broadcast %59 : vector<1x16xf32> to vector<16x16xf32>
    %134 = arith.addf %132, %133 : vector<16x16xf32>
    %cst_44 = arith.constant dense<0xFF800000> : vector<16xf32>
    %135 = vector.multi_reduction <maximumf>, %134, %cst_44 [1] : vector<16x16xf32> to vector<16xf32>
    %136 = vector.shape_cast %135 : vector<16xf32> to vector<16x1xf32>
    %137 = vector.broadcast %136 : vector<16x1xf32> to vector<16x16xf32>
    %138 = arith.subf %134, %137 : vector<16x16xf32>
    %139 = math.exp %138 : vector<16x16xf32>
    %cst_45 = arith.constant dense<0.000000e+00> : vector<16xf32>
    %140 = vector.multi_reduction <add>, %139, %cst_45 [1] : vector<16x16xf32> to vector<16xf32>
    %141 = vector.shape_cast %140 : vector<16xf32> to vector<16x1xf32>
    %142 = tpu.reciprocal %141 : vector<16x1xf32> -> vector<16x1xf32>
    %143 = vector.broadcast %142 : vector<16x1xf32> to vector<16x16xf32>
    %144 = arith.mulf %139, %143 : vector<16x16xf32>
    %cst_46 = arith.constant dense<0.000000e+00> : vector<16x8xf32>
    %145 = tpu.matmul %144, %129, %cst_46 {dimension_numbers = #tpu.dot_dimension_numbers<[1], [0], [0], [1], [0, 0, 1, 1], [], []>} : vector<16x16xf32>, vector<16x8xf32>, vector<16x8xf32> -> vector<16x8xf32>
    %146 = vector.extract_strided_slice %50 {offsets = [24, 0], sizes = [8, 32], strides = [1, 1]} : vector<32x32xf32> to vector<8x32xf32>
    %cst_47 = arith.constant dense<0.000000e+00> : vector<16x32xf32>
    %147 = tpu.matmul %145, %146, %cst_47 {dimension_numbers = #tpu.dot_dimension_numbers<[1], [0], [0], [1], [0, 0, 1, 1], [], []>} : vector<16x8xf32>, vector<8x32xf32>, vector<16x32xf32> -> vector<16x32xf32>
    %148 = arith.addf %126, %147 : vector<16x32xf32>
    %149 = vector.extract_strided_slice %38 {offsets = [16, 0], sizes = [16, 32], strides = [1, 1]} : vector<32x32xf32> to vector<16x32xf32>
    %150 = vector.extract_strided_slice %43 {offsets = [16, 0], sizes = [16, 32], strides = [1, 1]} : vector<32x32xf32> to vector<16x32xf32>
    %151 = vector.extract_strided_slice %48 {offsets = [16, 0], sizes = [16, 32], strides = [1, 1]} : vector<32x32xf32> to vector<16x32xf32>
    %152 = vector.extract_strided_slice %55 {offsets = [1, 0], sizes = [1, 16], strides = [1, 1]} : vector<2x16xf32> to vector<1x16xf32>
    %cst_48 = arith.constant 0.000000e+00 : f32
    %153 = vector.broadcast %cst_48 : f32 to vector<16x32xf32>
    %154 = vector.extract_strided_slice %149 {offsets = [0, 0], sizes = [16, 8], strides = [1, 1]} : vector<16x32xf32> to vector<16x8xf32>
    %155 = vector.extract_strided_slice %150 {offsets = [0, 0], sizes = [16, 8], strides = [1, 1]} : vector<16x32xf32> to vector<16x8xf32>
    %156 = vector.extract_strided_slice %151 {offsets = [0, 0], sizes = [16, 8], strides = [1, 1]} : vector<16x32xf32> to vector<16x8xf32>
    %cst_49 = arith.constant dense<0.000000e+00> : vector<16x16xf32>
    %157 = tpu.matmul %154, %155, %cst_49 {dimension_numbers = #tpu.dot_dimension_numbers<[1], [1], [0], [0], [0, 0, 1, 0], [], []>} : vector<16x8xf32>, vector<16x8xf32>, vector<16x16xf32> -> vector<16x16xf32>
    %cst_50 = arith.constant 0.353553385 : f32
    %158 = vector.broadcast %cst_50 : f32 to vector<16x16xf32>
    %159 = arith.mulf %157, %158 : vector<16x16xf32>
    %160 = vector.broadcast %152 : vector<1x16xf32> to vector<16x16xf32>
    %161 = arith.addf %159, %160 : vector<16x16xf32>
    %cst_51 = arith.constant dense<0xFF800000> : vector<16xf32>
    %162 = vector.multi_reduction <maximumf>, %161, %cst_51 [1] : vector<16x16xf32> to vector<16xf32>
    %163 = vector.shape_cast %162 : vector<16xf32> to vector<16x1xf32>
    %164 = vector.broadcast %163 : vector<16x1xf32> to vector<16x16xf32>
    %165 = arith.subf %161, %164 : vector<16x16xf32>
    %166 = math.exp %165 : vector<16x16xf32>
    %cst_52 = arith.constant dense<0.000000e+00> : vector<16xf32>
    %167 = vector.multi_reduction <add>, %166, %cst_52 [1] : vector<16x16xf32> to vector<16xf32>
    %168 = vector.shape_cast %167 : vector<16xf32> to vector<16x1xf32>
    %169 = tpu.reciprocal %168 : vector<16x1xf32> -> vector<16x1xf32>
    %170 = vector.broadcast %169 : vector<16x1xf32> to vector<16x16xf32>
    %171 = arith.mulf %166, %170 : vector<16x16xf32>
    %cst_53 = arith.constant dense<0.000000e+00> : vector<16x8xf32>
    %172 = tpu.matmul %171, %156, %cst_53 {dimension_numbers = #tpu.dot_dimension_numbers<[1], [0], [0], [1], [0, 0, 1, 1], [], []>} : vector<16x16xf32>, vector<16x8xf32>, vector<16x8xf32> -> vector<16x8xf32>
    %173 = vector.extract_strided_slice %50 {offsets = [0, 0], sizes = [8, 32], strides = [1, 1]} : vector<32x32xf32> to vector<8x32xf32>
    %cst_54 = arith.constant dense<0.000000e+00> : vector<16x32xf32>
    %174 = tpu.matmul %172, %173, %cst_54 {dimension_numbers = #tpu.dot_dimension_numbers<[1], [0], [0], [1], [0, 0, 1, 1], [], []>} : vector<16x8xf32>, vector<8x32xf32>, vector<16x32xf32> -> vector<16x32xf32>
    %175 = arith.addf %153, %174 : vector<16x32xf32>
    %176 = vector.extract_strided_slice %149 {offsets = [0, 8], sizes = [16, 8], strides = [1, 1]} : vector<16x32xf32> to vector<16x8xf32>
    %177 = vector.extract_strided_slice %150 {offsets = [0, 8], sizes = [16, 8], strides = [1, 1]} : vector<16x32xf32> to vector<16x8xf32>
    %178 = vector.extract_strided_slice %151 {offsets = [0, 8], sizes = [16, 8], strides = [1, 1]} : vector<16x32xf32> to vector<16x8xf32>
    %cst_55 = arith.constant dense<0.000000e+00> : vector<16x16xf32>
    %179 = tpu.matmul %176, %177, %cst_55 {dimension_numbers = #tpu.dot_dimension_numbers<[1], [1], [0], [0], [0, 0, 1, 0], [], []>} : vector<16x8xf32>, vector<16x8xf32>, vector<16x16xf32> -> vector<16x16xf32>
    %cst_56 = arith.constant 0.353553385 : f32
    %180 = vector.broadcast %cst_56 : f32 to vector<16x16xf32>
    %181 = arith.mulf %179, %180 : vector<16x16xf32>
    %182 = vector.broadcast %152 : vector<1x16xf32> to vector<16x16xf32>
    %183 = arith.addf %181, %182 : vector<16x16xf32>
    %cst_57 = arith.constant dense<0xFF800000> : vector<16xf32>
    %184 = vector.multi_reduction <maximumf>, %183, %cst_57 [1] : vector<16x16xf32> to vector<16xf32>
    %185 = vector.shape_cast %184 : vector<16xf32> to vector<16x1xf32>
    %186 = vector.broadcast %185 : vector<16x1xf32> to vector<16x16xf32>
    %187 = arith.subf %183, %186 : vector<16x16xf32>
    %188 = math.exp %187 : vector<16x16xf32>
    %cst_58 = arith.constant dense<0.000000e+00> : vector<16xf32>
    %189 = vector.multi_reduction <add>, %188, %cst_58 [1] : vector<16x16xf32> to vector<16xf32>
    %190 = vector.shape_cast %189 : vector<16xf32> to vector<16x1xf32>
    %191 = tpu.reciprocal %190 : vector<16x1xf32> -> vector<16x1xf32>
    %192 = vector.broadcast %191 : vector<16x1xf32> to vector<16x16xf32>
    %193 = arith.mulf %188, %192 : vector<16x16xf32>
    %cst_59 = arith.constant dense<0.000000e+00> : vector<16x8xf32>
    %194 = tpu.matmul %193, %178, %cst_59 {dimension_numbers = #tpu.dot_dimension_numbers<[1], [0], [0], [1], [0, 0, 1, 1], [], []>} : vector<16x16xf32>, vector<16x8xf32>, vector<16x8xf32> -> vector<16x8xf32>
    %195 = vector.extract_strided_slice %50 {offsets = [8, 0], sizes = [8, 32], strides = [1, 1]} : vector<32x32xf32> to vector<8x32xf32>
    %cst_60 = arith.constant dense<0.000000e+00> : vector<16x32xf32>
    %196 = tpu.matmul %194, %195, %cst_60 {dimension_numbers = #tpu.dot_dimension_numbers<[1], [0], [0], [1], [0, 0, 1, 1], [], []>} : vector<16x8xf32>, vector<8x32xf32>, vector<16x32xf32> -> vector<16x32xf32>
    %197 = arith.addf %175, %196 : vector<16x32xf32>
    %198 = vector.extract_strided_slice %149 {offsets = [0, 16], sizes = [16, 8], strides = [1, 1]} : vector<16x32xf32> to vector<16x8xf32>
    %199 = vector.extract_strided_slice %150 {offsets = [0, 16], sizes = [16, 8], strides = [1, 1]} : vector<16x32xf32> to vector<16x8xf32>
    %200 = vector.extract_strided_slice %151 {offsets = [0, 16], sizes = [16, 8], strides = [1, 1]} : vector<16x32xf32> to vector<16x8xf32>
    %cst_61 = arith.constant dense<0.000000e+00> : vector<16x16xf32>
    %201 = tpu.matmul %198, %199, %cst_61 {dimension_numbers = #tpu.dot_dimension_numbers<[1], [1], [0], [0], [0, 0, 1, 0], [], []>} : vector<16x8xf32>, vector<16x8xf32>, vector<16x16xf32> -> vector<16x16xf32>
    %cst_62 = arith.constant 0.353553385 : f32
    %202 = vector.broadcast %cst_62 : f32 to vector<16x16xf32>
    %203 = arith.mulf %201, %202 : vector<16x16xf32>
    %204 = vector.broadcast %152 : vector<1x16xf32> to vector<16x16xf32>
    %205 = arith.addf %203, %204 : vector<16x16xf32>
    %cst_63 = arith.constant dense<0xFF800000> : vector<16xf32>
    %206 = vector.multi_reduction <maximumf>, %205, %cst_63 [1] : vector<16x16xf32> to vector<16xf32>
    %207 = vector.shape_cast %206 : vector<16xf32> to vector<16x1xf32>
    %208 = vector.broadcast %207 : vector<16x1xf32> to vector<16x16xf32>
    %209 = arith.subf %205, %208 : vector<16x16xf32>
    %210 = math.exp %209 : vector<16x16xf32>
    %cst_64 = arith.constant dense<0.000000e+00> : vector<16xf32>
    %211 = vector.multi_reduction <add>, %210, %cst_64 [1] : vector<16x16xf32> to vector<16xf32>
    %212 = vector.shape_cast %211 : vector<16xf32> to vector<16x1xf32>
    %213 = tpu.reciprocal %212 : vector<16x1xf32> -> vector<16x1xf32>
    %214 = vector.broadcast %213 : vector<16x1xf32> to vector<16x16xf32>
    %215 = arith.mulf %210, %214 : vector<16x16xf32>
    %cst_65 = arith.constant dense<0.000000e+00> : vector<16x8xf32>
    %216 = tpu.matmul %215, %200, %cst_65 {dimension_numbers = #tpu.dot_dimension_numbers<[1], [0], [0], [1], [0, 0, 1, 1], [], []>} : vector<16x16xf32>, vector<16x8xf32>, vector<16x8xf32> -> vector<16x8xf32>
    %217 = vector.extract_strided_slice %50 {offsets = [16, 0], sizes = [8, 32], strides = [1, 1]} : vector<32x32xf32> to vector<8x32xf32>
    %cst_66 = arith.constant dense<0.000000e+00> : vector<16x32xf32>
    %218 = tpu.matmul %216, %217, %cst_66 {dimension_numbers = #tpu.dot_dimension_numbers<[1], [0], [0], [1], [0, 0, 1, 1], [], []>} : vector<16x8xf32>, vector<8x32xf32>, vector<16x32xf32> -> vector<16x32xf32>
    %219 = arith.addf %197, %218 : vector<16x32xf32>
    %220 = vector.extract_strided_slice %149 {offsets = [0, 24], sizes = [16, 8], strides = [1, 1]} : vector<16x32xf32> to vector<16x8xf32>
    %221 = vector.extract_strided_slice %150 {offsets = [0, 24], sizes = [16, 8], strides = [1, 1]} : vector<16x32xf32> to vector<16x8xf32>
    %222 = vector.extract_strided_slice %151 {offsets = [0, 24], sizes = [16, 8], strides = [1, 1]} : vector<16x32xf32> to vector<16x8xf32>
    %cst_67 = arith.constant dense<0.000000e+00> : vector<16x16xf32>
    %223 = tpu.matmul %220, %221, %cst_67 {dimension_numbers = #tpu.dot_dimension_numbers<[1], [1], [0], [0], [0, 0, 1, 0], [], []>} : vector<16x8xf32>, vector<16x8xf32>, vector<16x16xf32> -> vector<16x16xf32>
    %cst_68 = arith.constant 0.353553385 : f32
    %224 = vector.broadcast %cst_68 : f32 to vector<16x16xf32>
    %225 = arith.mulf %223, %224 : vector<16x16xf32>
    %226 = vector.broadcast %152 : vector<1x16xf32> to vector<16x16xf32>
    %227 = arith.addf %225, %226 : vector<16x16xf32>
    %cst_69 = arith.constant dense<0xFF800000> : vector<16xf32>
    %228 = vector.multi_reduction <maximumf>, %227, %cst_69 [1] : vector<16x16xf32> to vector<16xf32>
    %229 = vector.shape_cast %228 : vector<16xf32> to vector<16x1xf32>
    %230 = vector.broadcast %229 : vector<16x1xf32> to vector<16x16xf32>
    %231 = arith.subf %227, %230 : vector<16x16xf32>
    %232 = math.exp %231 : vector<16x16xf32>
    %cst_70 = arith.constant dense<0.000000e+00> : vector<16xf32>
    %233 = vector.multi_reduction <add>, %232, %cst_70 [1] : vector<16x16xf32> to vector<16xf32>
    %234 = vector.shape_cast %233 : vector<16xf32> to vector<16x1xf32>
    %235 = tpu.reciprocal %234 : vector<16x1xf32> -> vector<16x1xf32>
    %236 = vector.broadcast %235 : vector<16x1xf32> to vector<16x16xf32>
    %237 = arith.mulf %232, %236 : vector<16x16xf32>
    %cst_71 = arith.constant dense<0.000000e+00> : vector<16x8xf32>
    %238 = tpu.matmul %237, %222, %cst_71 {dimension_numbers = #tpu.dot_dimension_numbers<[1], [0], [0], [1], [0, 0, 1, 1], [], []>} : vector<16x16xf32>, vector<16x8xf32>, vector<16x8xf32> -> vector<16x8xf32>
    %239 = vector.extract_strided_slice %50 {offsets = [24, 0], sizes = [8, 32], strides = [1, 1]} : vector<32x32xf32> to vector<8x32xf32>
    %cst_72 = arith.constant dense<0.000000e+00> : vector<16x32xf32>
    %240 = tpu.matmul %238, %239, %cst_72 {dimension_numbers = #tpu.dot_dimension_numbers<[1], [0], [0], [1], [0, 0, 1, 1], [], []>} : vector<16x8xf32>, vector<8x32xf32>, vector<16x32xf32> -> vector<16x32xf32>
    %241 = arith.addf %219, %240 : vector<16x32xf32>
    %242 = tpu.concatenate %148, %241 in 0 : vector<16x32xf32>, vector<16x32xf32> -> vector<32x32xf32>
    %243 = vector.broadcast %7 : vector<1x32xf32> to vector<32x32xf32>
    %244 = arith.addf %242, %243 : vector<32x32xf32>
    %245 = arith.addf %0, %244 : vector<32x32xf32>
    %cst_73 = arith.constant dense<0.000000e+00> : vector<32xf32>
    %246 = vector.multi_reduction <add>, %245, %cst_73 [1] : vector<32x32xf32> to vector<32xf32>
    %247 = vector.shape_cast %246 : vector<32xf32> to vector<32x1xf32>
    %cst_74 = arith.constant 3.200000e+01 : f32
    %248 = vector.broadcast %cst_74 : f32 to vector<32x1xf32>
    %249 = arith.divf %247, %248 : vector<32x1xf32>
    %250 = vector.broadcast %249 : vector<32x1xf32> to vector<32x32xf32>
    %251 = arith.subf %245, %250 : vector<32x32xf32>
    %252 = arith.mulf %251, %251 : vector<32x32xf32>
    %cst_75 = arith.constant dense<0.000000e+00> : vector<32xf32>
    %253 = vector.multi_reduction <add>, %252, %cst_75 [1] : vector<32x32xf32> to vector<32xf32>
    %254 = vector.shape_cast %253 : vector<32xf32> to vector<32x1xf32>
    %cst_76 = arith.constant 0.0322580636 : f32
    %255 = vector.broadcast %cst_76 : f32 to vector<32x1xf32>
    %256 = arith.mulf %254, %255 : vector<32x1xf32>
    %257 = math.sqrt %256 : vector<32x1xf32>
    %cst_77 = arith.constant 9.99999997E-7 : f32
    %258 = vector.broadcast %cst_77 : f32 to vector<32x1xf32>
    %259 = arith.addf %257, %258 : vector<32x1xf32>
    %260 = tpu.reciprocal %259 : vector<32x1xf32> -> vector<32x1xf32>
    %261 = vector.broadcast %249 : vector<32x1xf32> to vector<32x32xf32>
    %262 = arith.subf %245, %261 : vector<32x32xf32>
    %263 = vector.broadcast %8 : vector<1x32xf32> to vector<32x32xf32>
    %264 = arith.mulf %263, %262 : vector<32x32xf32>
    %265 = vector.broadcast %260 : vector<32x1xf32> to vector<32x32xf32>
    %266 = arith.mulf %264, %265 : vector<32x32xf32>
    %267 = vector.broadcast %9 : vector<1x32xf32> to vector<32x32xf32>
    %268 = arith.addf %266, %267 : vector<32x32xf32>
    %c0_78 = arith.constant 0 : index
    %c0_79 = arith.constant 0 : index
    %269 = vector.load %arg4[%c0_78, %c0_79] : memref<32x64xf32, #tpu.memory_space<vmem>>, vector<32x64xf32>
    %cst_80 = arith.constant dense<0.000000e+00> : vector<32x64xf32>
    %270 = tpu.matmul %268, %269, %cst_80 {dimension_numbers = #tpu.dot_dimension_numbers<[1], [0], [0], [1], [0, 0, 1, 1], [], []>} : vector<32x32xf32>, vector<32x64xf32>, vector<32x64xf32> -> vector<32x64xf32>
    %c0_81 = arith.constant 0 : index
    %c0_82 = arith.constant 0 : index
    %271 = vector.load %arg5[%c0_81, %c0_82] : memref<1x64xf32, #tpu.memory_space<vmem>>, vector<1x64xf32>
    %272 = vector.broadcast %271 : vector<1x64xf32> to vector<32x64xf32>
    %273 = arith.addf %270, %272 : vector<32x64xf32>
    %cst_83 = arith.constant 0.000000e+00 : f32
    %274 = vector.broadcast %cst_83 : f32 to vector<32x64xf32>
    %275 = arith.maximumf %273, %274 : vector<32x64xf32>
    %c0_84 = arith.constant 0 : index
    %c0_85 = arith.constant 0 : index
    %276 = vector.load %arg6[%c0_84, %c0_85] : memref<64x32xf32, #tpu.memory_space<vmem>>, vector<64x32xf32>
    %cst_86 = arith.constant dense<0.000000e+00> : vector<32x32xf32>
    %277 = tpu.matmul %275, %276, %cst_86 {dimension_numbers = #tpu.dot_dimension_numbers<[1], [0], [0], [1], [0, 0, 1, 1], [], []>} : vector<32x64xf32>, vector<64x32xf32>, vector<32x32xf32> -> vector<32x32xf32>
    %278 = vector.broadcast %10 : vector<1x32xf32> to vector<32x32xf32>
    %279 = arith.addf %277, %278 : vector<32x32xf32>
    %280 = arith.addf %245, %279 : vector<32x32xf32>
    %c0_87 = arith.constant 0 : index
    %c0_88 = arith.constant 0 : index
    %281 = vector.load %arg7[%c0_87, %c0_88] : memref<32x32xf32, #tpu.memory_space<vmem>>, vector<32x32xf32>
    tpu.vector_store %arg7[%c0_87, %c0_88], %280 {strides = array<i32>} : memref<32x32xf32, #tpu.memory_space<vmem>>, vector<32x32xf32>,
    return
  }
}

</mosaic_0001>

<bundles_post_ra>
// kernel: tpu_custom_call.1
= control target key start
LH: loop header
LB: loop body
LE: loop exit
PB: predicated region body
PF: predicated region fallthrough
CT: control target
= control target key end

     0   :  { %12 = vsyncpa [#allocation3], 0  ;;  %s4284_s0 = inlined_call_operand.vmem [shape: f32[32,32], index: 0, kind: input, shape index: {}]   ;;  %s4285_s1 = inlined_call_operand.vmem [shape: f32[2,16], index: 1, kind: input, shape index: {}]   ;;  %s4286_s2 = inlined_call_operand.hbm [shape: f32[4,32,32], index: 2, kind: input, shape index: {}]   ;;  %s4287_s3 = inlined_call_operand.vmem [shape: f32[9,32], index: 3, kind: input, shape index: {}]   ;;  %s4288_s4 = inlined_call_operand.vmem [shape: f32[32,64], index: 4, kind: input, shape index: {}]   ;;  %s4289_s5 = inlined_call_operand.vmem [shape: f32[1,64], index: 5, kind: input, shape index: {}]   ;;  %s4290_s6 = inlined_call_operand.vmem [shape: f32[64,32], index: 6, kind: input, shape index: {}]   ;;  %s4291_s7 = inlined_call_operand.hbm [shape: f32[32,32], index: 7, kind: output, shape index: {}]  }
   0x1   :  { %13 = vsyncpa [#allocation4], 0  ;;  %s3684_s24 = smov [#allocation2]  }
   0x2   :  { %s23_s25 = sshll.u32 %s3684_s24, 4  ;;  %s24_s25 = int_to_ptr.vmem [resolvable:$true] %s23_s25 }
   0x3   :  { %s3648_s26 = scalar_lea.vmem %s24_s25, 2048  ;;  %p3653_p1 = scmp.lt.s32.totalorder %s24_s25, %s24_s25 }
   0x4   :  { %p3649_p0 = scmp.ne.s32.totalorder %s24_s25, %s3648_s26  ;;  %p3654_p2 = scmp.lt.s32.totalorder %s3648_s26, %s3648_s26 }
   0x6   :  { %p3655_p3 = por %p3654_p2, %p3653_p1 }
   0x8   :  { %p3656_p4 = pnand %p3655_p3, %p3649_p0 }
   0xa   :  { %3659 = shalt.err (!%p3656_p4)
}
   0xb   :  { %s3685_s27 = smov 128   ;;  %s3686_s28 = smov 8  }
   0xc   :  { %29 = dma.hbm_to_vmem [thread:$0]  %s4286_s2, 2048, %s24_s25, [#allocation3], %s3685_s27, %s3685_s27, %s3686_s28  }
   0xd   :  { %3680 = dma.done.wait [#allocation3], 2048  }
   0xe   :  { %3681 = vsyncadd [#allocation3], 4294965248  ;;  %vm47_vm0 = vcmask 261120   ;;  %v41_v0 = vld [vmem:[%s4284_s0] sm:$0xff]  ;;  %v42_v1 = vld [vmem:[%s4284_s0 + $0x8] sm:$0xff]  ;;  %v125_v45 = vlaneseq  ;;  %vm446_vm9 = vcmask 64512  }
   0xf   :  { %v48_v2 = vsel %vm47_vm0, %v41_v0, 0.0  ;;  %v51_v3 = vsel %vm47_vm0, %v42_v1, 0.0  ;;  %v43_v4 = vld [vmem:[%s4284_s0 + $0x10] sm:$0xff]  ;;  %v44_v17 = vld [vmem:[%s4284_s0 + $0x18] sm:$0xff]  ;;  %v146_v27 = vld [vmem:[#allocation2 + $0x8] sm:$0xff]  ;;  %s3687_s17 = smov 120  }
  0x10   :  { %49 = vadd.xlane.f32.xlu0 %v48_v2  ;;  %v54_v5 = vsel %vm47_vm0, %v43_v4, 0.0  ;;  %v57_v20 = vsel %vm47_vm0, %v44_v17, 0.0  ;;  %v148_v23 = vld [vmem:[#allocation2 + $0x18] sm:$0xff]  ;;  %v147_v25 = vld [vmem:[#allocation2 + $0x10] sm:$0xff]  ;;  %v252_v28 = vld [vmem:[#allocation2 + $0x28] sm:$0xff]  ;;  %v3773_v52 = vshrl.u32 %v125_v45, 7 }
  0x11   :  { %v254_v24 = vld [vmem:[#allocation2 + $0x38] sm:$0xff]  ;;  %3302 = vmatprep.subr.mxu0 %v148_v23  ;;  %v253_v26 = vld [vmem:[#allocation2 + $0x30] sm:$0xff]  ;;  %v145_v29 = vld [vmem:[#allocation2] sm:$0xff]  ;;  %vm542_vm10 = vcmask 130048   ;;  %s3689_s20 = smov 104  }
  0x12   :  { %3316 = vmatprep.subr.mxu1 %v254_v24  ;;  %3303 = vmatpush3.msra.mxu0 %v148_v23  ;;  %v251_v30 = vld [vmem:[#allocation2 + $0x20] sm:$0xff]  ;;  %v127_v59 = vsub.s32 0, %v3773_v52 }
  0x13   :  { %3317 = vmatpush3.msra.mxu1 %v254_v24  ;;  %3304 = vmatprep.subr.mxu0 %v147_v25  ;;  %v3779_v61 = vld [vmem:[%s4287_s3] sm:$0xff] }
  0x14   :  { %52 = vadd.xlane.f32.xlu0 %v51_v3  ;;  %3318 = vmatprep.subr.mxu1 %v253_v26 }
  0x15   :  { %3305 = vmatpush3.msra.mxu0 %v147_v25  ;;  %3319 = vmatpush3.msra.mxu1 %v253_v26 }
  0x16   :  { %3306 = vmatprep.subr.mxu0 %v146_v27  ;;  %3320 = vmatprep.subr.mxu1 %v252_v28 }
  0x17   :  { %3307 = vmatpush3.msra.mxu0 %v146_v27  ;;  %3321 = vmatpush3.msra.mxu1 %v252_v28 }
  0x18   :  { %55 = vadd.xlane.f32.xlu0 %v54_v5  ;;  %3308 = vmatprep.subr.mxu0 %v145_v29 }
  0x19   :  { %3322 = vmatprep.subr.mxu1 %v251_v30  ;;  %3309 = vmatpush3.msra.mxu0 %v145_v29 }
  0x1a   :  { %3323 = vmatpush3.msra.mxu1 %v251_v30 }
  0x99   :  { %v50_v6 = vpop.xlane.xlu0 %49 }
  0x9a   :  { %v61_v7 = vmul.f32 0.03125, %v50_v6 }
  0x9c   :  { %v3749_v8 = vsub.f32 %v41_v0, %v61_v7  ;;  %v128_v0 = vrot.slane %v3779_v61, %v127_v59 }
  0x9d   :  { %v53_v9 = vpop.xlane.xlu0 %52 }
  0x9e   :  { %v62_v10 = vmul.f32 0.03125, %v53_v9  ;;  %v69_v11 = vmul.f32 %v3749_v8, %v3749_v8  ;;  %v129_v2 = vmul.f32 %v128_v0, %v3749_v8 }
  0xa0   :  { %v3753_v12 = vsub.f32 %v42_v1, %v62_v10  ;;  %v73_v13 = vsel %vm47_vm0, %v69_v11, 0.0  ;;  %v139_v1 = vsub.s32 1, %v3773_v52 }
  0xa1   :  { %74 = vadd.xlane.f32.xlu1 %v73_v13  ;;  %v56_v14 = vpop.xlane.xlu0 %55 }
  0xa2   :  { %v70_v15 = vmul.f32 %v3753_v12, %v3753_v12  ;;  %v63_v16 = vmul.f32 0.03125, %v56_v14  ;;  %v140_v3 = vrot.slane %v3779_v61, %v139_v1  ;;  %v130_v6 = vmul.f32 %v128_v0, %v3753_v12  ;;  %v347_v12 = vld [vmem:[#allocation2 + $0x50] sm:$0xff] }
  0xa4   :  { %v76_v18 = vsel %vm47_vm0, %v70_v15, 0.0  ;;  %v3762_v19 = vsub.f32 %v43_v4, %v63_v16  ;;  %v348_v16 = vld [vmem:[#allocation2 + $0x58] sm:$0xff] }
  0xa5   :  { %77 = vadd.xlane.f32.xlu1 %v76_v18  ;;  %3330 = vmatprep.subr.mxu0 %v348_v16  ;;  %v345_v18 = vld [vmem:[#allocation2 + $0x40] sm:$0xff] }
  0xa6   :  { %v71_v21 = vmul.f32 %v3762_v19, %v3762_v19  ;;  %v131_v10 = vmul.f32 %v128_v0, %v3762_v19 }
  0xa8   :  { %v79_v22 = vsel %vm47_vm0, %v71_v21, 0.0 }
  0xa9   :  { %58 = vadd.xlane.f32.xlu1 %v57_v20  ;;  %80 = vadd.xlane.f32.xlu0 %v79_v22 }
 0x12a   :  { %v75_v31 = vpop.xlane.xlu1 %74 }
 0x12b   :  { %v85_v32 = vmul.f32 0.032258064, %v75_v31  ;;  %v257_v31 = vsub.s32 3, %v3773_v52 }
 0x12d   :  { %3539 = vrsqrt.f32 %v85_v32  ;;  %vm91_vm1 = vcmp.eq.f32.partialorder %v85_v32, inf  ;;  %v94_v44 = vand.u32 2147483648, %v85_v32  ;;  %vm93_vm2 = vcmp.eq.f32.partialorder %v85_v32, 0.0 }
 0x12e   :  { %v78_v33 = vpop.xlane.xlu1 %77 }
 0x12f   :  { %v86_v34 = vmul.f32 0.032258064, %v78_v33  ;;  %v3807_v33 = vrot.slane %v3779_v61, %v257_v31 }
 0x131   :  { %3541 = vrsqrt.f32 %v86_v34  ;;  %vm98_vm3 = vcmp.eq.f32.partialorder %v86_v34, inf  ;;  %v101_v51 = vand.u32 2147483648, %v86_v34  ;;  %vm100_vm4 = vcmp.eq.f32.partialorder %v86_v34, 0.0 }
 0x132   :  { %v59_v35 = vpop.xlane.xlu1 %58  ;;  %v81_v36 = vpop.xlane.xlu0 %80 }
 0x133   :  { %v64_v37 = vmul.f32 0.03125, %v59_v35  ;;  %v87_v38 = vmul.f32 0.032258064, %v81_v36 }
 0x135   :  { %v3768_v39 = vsub.f32 %v44_v17, %v64_v37  ;;  %3543 = vrsqrt.f32 %v87_v38  ;;  %vm105_vm5 = vcmp.eq.f32.partialorder %v87_v38, inf  ;;  %v108_v56 = vand.u32 2147483648, %v87_v38  ;;  %v346_v17 = vld [vmem:[#allocation2 + $0x48] sm:$0xff] }
 0x136   :  { %vm107_vm6 = vcmp.eq.f32.partialorder %v87_v38, 0.0 }
 0x137   :  { %v72_v40 = vmul.f32 %v3768_v39, %v3768_v39  ;;  %v132_v27 = vmul.f32 %v128_v0, %v3768_v39 }
 0x139   :  { %v82_v41 = vsel %vm47_vm0, %v72_v40, 0.0 }
 0x13a   :  { %v3540_v42 = vpop.eup %3539  ;;  %83 = vadd.xlane.f32.xlu1 %v82_v41 }
 0x13b   :  { %v90_v43 = vmul.f32 %v3540_v42, %v85_v32 }
 0x13d   :  { %v92_v46 = vsel %vm91_vm1, %v85_v32, %v90_v43  ;;  %v151_v32 = vsub.s32 2, %v3773_v52 }
 0x13e   :  { %v3542_v47 = vpop.eup %3541  ;;  %v95_v48 = vsel %vm93_vm2, %v94_v44, %v92_v46 }
 0x13f   :  { %v97_v49 = vmul.f32 %v3542_v47, %v86_v34  ;;  %v117_v50 = vadd.f32 1e-06, %v95_v48  ;;  %v3810_v36 = vrot.slane %v3779_v61, %v151_v32  ;;  %v351_v47 = vsub.s32 4, %v3773_v52  ;;  %v3909_v32 = vld [vmem:[#allocation2 + $0x68] sm:$0xff] }
 0x141   :  { %v99_v53 = vsel %vm98_vm3, %v86_v34, %v97_v49  ;;  %3545 = vrcp.f32 %v117_v50  ;;  %v3850_v49 = vrot.slane %v3779_v61, %v351_v47 }
 0x142   :  { %v3544_v54 = vpop.eup %3543  ;;  %v102_v55 = vsel %vm100_vm4, %v101_v51, %v99_v53  ;;  %vm2960_vm4 = vcmask 523264  }
 0x143   :  { %v118_v57 = vadd.f32 1e-06, %v102_v55  ;;  %v104_v58 = vmul.f32 %v3544_v54, %v87_v38 }
 0x145   :  { %3547 = vrcp.f32 %v118_v57  ;;  %v106_v60 = vsel %vm105_vm5, %v87_v38, %v104_v58  ;;  %v443_v58 = vld [vmem:[%s4285_s1] sm:$0x3]  ;;  %s3688_s1 = smov 112  }
 0x146   :  { %v109_v62 = vsel %vm107_vm6, %v108_v56, %v106_v60  ;;  %v3095_v60 = vadd.f32 -1.0, %v443_v58 }
 0x147   :  { %v119_v63 = vadd.f32 1e-06, %v109_v62 }
 0x148   :  { %v3870_v61 = vmul.f32 1e+09, %v3095_v60 }
 0x149   :  { %3549 = vrcp.f32 %v119_v63 }
 0x14a   :  { %v3877_v0 = vrot.slane %v3870_v61, %v127_v59 }
 0x14e   :  { %v3546_v4 = vpop.eup %3545 }
 0x14f   :  { %v133_v5 = vmul.f32 %v3546_v4, %v129_v2 }
 0x151   :  { %v141_v7 = vadd.f32 %v140_v3, %v133_v5 }
 0x152   :  { %v3548_v9 = vpop.eup %3547 }
 0x153   :  { %3310 = vmatprep.mubr.msk.f32.mxu0 %vm47_vm0, %v141_v7  ;;  %3324 = vmatprep.mubr.msk.f32.mxu1 %vm47_vm0, %v141_v7  ;;  %v134_v11 = vmul.f32 %v3548_v9, %v130_v6 }
 0x155   :  { %v142_v13 = vadd.f32 %v140_v3, %v134_v11 }
 0x156   :  { %v3550_v14 = vpop.eup %3549 }
 0x157   :  { %3311 = vmatmul.mubr.msk.f32.vlgmr.msra.gmra.mxu0 %vm47_vm0, %v142_v13  ;;  %3325 = vmatmul.mubr.msk.f32.vlgmr.msra.gmra.mxu1 %vm47_vm0, %v142_v13  ;;  %v135_v8 = vmul.f32 %v3550_v14, %v131_v10 }
 0x158   :  { %3331 = vmatpush3.msra.mxu0 %v348_v16 }
 0x159   :  { %v143_v15 = vadd.f32 %v140_v3, %v135_v8  ;;  %3332 = vmatprep.subr.mxu0 %v347_v12 }
 0x15a   :  { %3333 = vmatpush3.msra.mxu0 %v347_v12 }
 0x15b   :  { %3313 = vmatprep.mubr.msk.f32.mxu0 %vm47_vm0, %v143_v15  ;;  %3327 = vmatprep.mubr.msk.f32.mxu1 %vm47_vm0, %v143_v15 }
 0x15c   :  { %3334 = vmatprep.subr.mxu0 %v346_v17 }
 0x15d   :  { %3335 = vmatpush3.msra.mxu0 %v346_v17 }
 0x15e   :  { %3336 = vmatprep.subr.mxu0 %v345_v18 }
 0x15f   :  { %3337 = vmatpush3.msra.mxu0 %v345_v18 }
 0x1c3   :  { %v84_v19 = vpop.xlane.xlu1 %83 }
 0x1c4   :  { %v88_v20 = vmul.f32 0.032258064, %v84_v19 }
 0x1c6   :  { %3551 = vrsqrt.f32 %v88_v20  ;;  %vm112_vm7 = vcmp.eq.f32.partialorder %v88_v20, inf  ;;  %v115_v22 = vand.u32 2147483648, %v88_v20  ;;  %vm114_vm8 = vcmp.eq.f32.partialorder %v88_v20, 0.0 }
 0x1d3   :  { %v3552_v21 = vpop.eup %3551 }
 0x1d4   :  { %v111_v23 = vmul.f32 %v3552_v21, %v88_v20 }
 0x1d6   :  { %v113_v24 = vsel %vm112_vm7, %v88_v20, %v111_v23 }
 0x1d7   :  { %v116_v25 = vsel %vm114_vm8, %v115_v22, %v113_v24 }
 0x1d8   :  { %v120_v26 = vadd.f32 1e-06, %v116_v25 }
 0x1da   :  { %3553 = vrcp.f32 %v120_v26 }
 0x1e7   :  { %v3554_v28 = vpop.eup %3553 }
 0x1e8   :  { %v136_v29 = vmul.f32 %v3554_v28, %v132_v27 }
 0x1ea   :  { %v144_v30 = vadd.f32 %v140_v3, %v136_v29 }
 0x1ec   :  { %3314 = vmatmul.mubr.msk.f32.gmra.mxu0 %vm47_vm0, %v144_v30  ;;  %3328 = vmatmul.mubr.msk.f32.gmra.mxu1 %vm47_vm0, %v144_v30 }
 0x1ed   :  { %3338 = vmatprep.mubr.msk.f32.mxu0 %vm47_vm0, %v141_v7 }
 0x1f0   :  { %3339 = vmatmul.mubr.msk.f32.vlgmr.msra.gmra.mxu0 %vm47_vm0, %v142_v13 }
 0x1f1   :  { %3341 = vmatprep.mubr.msk.f32.mxu0 %vm47_vm0, %v143_v15 }
 0x1f4   :  { %3342 = vmatmul.mubr.msk.f32.gmra.mxu0 %vm47_vm0, %v144_v30 }
 0x217   :  { %v3312_v34 = vpop.f32.mrf.mxu0  ;;  %v3326_v35 = vpop.f32.mrf.mxu1 }
 0x218   :  { %v3813_v37 = vadd.f32 %v3326_v35, %v3807_v33  ;;  %v237_v42 = vadd.f32 %v3312_v34, %v3810_v36 }
 0x219   :  { %v231_v38 = vpop.f32.mrf.mxu0  ;;  %v325_v39 = vpop.f32.mrf.mxu1 }
 0x21a   :  { %v3816_v40 = vadd.f32 %v231_v38, %v3810_v36  ;;  %v3819_v41 = vadd.f32 %v325_v39, %v3807_v33  ;;  %3344 = vmatprep.subr.msk.mxu1 %vm446_vm9, %v3813_v37  ;;  %652 = vrot.lane.b32.xlu0 %v3813_v37, %s3687_s17 }
 0x21b   :  { %3345 = vmatpush3.xpose.msk.msra.mxu1 %vm446_vm9, %v3813_v37 }
 0x21c   :  { %3346 = vmatprep.subr.msk.mxu1 %vm446_vm9, %v3819_v41  ;;  %650 = vrot.lane.b32.xlu1 %v3819_v41, %s3687_s17 }
 0x21d   :  { %3348 = vmatprep.mubr.msk.f32.mxu1 %vm446_vm9, %v3816_v40 }
 0x21f   :  { %3347 = vmatpush3.xpose.msk.msra.mxu1 %vm446_vm9, %v3819_v41 }
 0x220   :  { %646 = vrot.lane.b32.xlu1 %v3816_v40, %s3687_s17 }
 0x222   :  { %3349 = vmatmul.mubr.msk.f32.vlgmr.msra.gmra.mxu1 %vm446_vm9, %v237_v42 }
 0x224   :  { %648 = vrot.lane.b32.xlu1 %v237_v42, %s3687_s17 }
 0x28c   :  { %v653_v43 = vpop.permute.xlu0 %652 }
 0x28d   :  { %3358 = vmatprep.subr.msk.mxu0 %vm446_vm9, %v653_v43 }
 0x28e   :  { %v651_v44 = vpop.permute.xlu1 %650  ;;  %3359 = vmatpush3.xpose.msk.msra.mxu0 %vm446_vm9, %v653_v43 }
 0x28f   :  { %3360 = vmatprep.subr.msk.mxu0 %vm446_vm9, %v651_v44 }
 0x292   :  { %v647_v45 = vpop.permute.xlu1 %646  ;;  %3361 = vmatpush3.xpose.msk.msra.mxu0 %vm446_vm9, %v651_v44 }
 0x293   :  { %3362 = vmatprep.mubr.msk.f32.mxu0 %vm446_vm9, %v647_v45 }
 0x296   :  { %v649_v46 = vpop.permute.xlu1 %648 }
 0x297   :  { %3363 = vmatmul.mubr.msk.f32.vlgmr.msra.gmra.mxu0 %vm446_vm9, %v649_v46 }
 0x2ac   :  { %v3847_v48 = vpop.f32.mrf.mxu0  ;;  %v3890_v59 = vpop.f32.mrf.mxu1 }
 0x2ae   :  { %v3852_v50 = vpop.f32.mrf.mxu0  ;;  %v3892_v10 = vpop.f32.mrf.mxu1 }
 0x2b0   :  { %v3340_v51 = vpop.f32.mrf.mxu0 }
 0x2b1   :  { %v3855_v53 = vadd.f32 %v3340_v51, %v3850_v49 }
 0x2b2   :  { %v419_v54 = vpop.f32.mrf.mxu0 }
 0x2b3   :  { %v3858_v55 = vadd.f32 %v419_v54, %v3850_v49  ;;  %3351 = vmatprep.subr.mxu1 %v3855_v53 }
 0x2b4   :  { %v3343_v56 = vpop.f32.mrf.mxu0  ;;  %3352 = vmatpush3.msra.mxu1 %v3855_v53 }
 0x2b5   :  { %v3863_v57 = vadd.f32 %v3343_v56, %v3850_v49  ;;  %3353 = vmatprep.subr.mxu1 %v3858_v55 }
 0x2b6   :  { %3354 = vmatpush3.msra.mxu1 %v3858_v55  ;;  %v3872_v62 = vpop.f32.mrf.mxu0 }
 0x2e2   :  { %v3350_v11 = vpop.f32.mrf.mxu1 }
 0x2e3   :  { %v535_v13 = vmul.f32 0.35355338, %v3350_v11 }
 0x2e4   :  { %v525_v24 = vpop.f32.mrf.mxu1 }
 0x2e5   :  { %v541_v14 = vadd.f32 %v3877_v0, %v535_v13  ;;  %v534_v25 = vmul.f32 0.35355338, %v525_v24 }
 0x2e7   :  { %v546_v8 = vsel %vm542_vm10, %v541_v14, -inf  ;;  %v540_v26 = vadd.f32 %v3877_v0, %v534_v25 }
 0x2e9   :  { %v543_v27 = vsel %vm542_vm10, %v540_v26, -inf }
 0x357   :  { %v3364_v63 = vpop.f32.mrf.mxu0 }
 0x358   :  { %v738_v2 = vmul.f32 0.35355338, %v3364_v63 }
 0x359   :  { %v728_v3 = vpop.f32.mrf.mxu0 }
 0x35a   :  { %v737_v4 = vmul.f32 0.35355338, %v728_v3  ;;  %v740_v5 = vadd.f32 %v738_v2, %v3877_v0 }
 0x35c   :  { %v744_v6 = vsel %vm542_vm10, %v740_v5, -inf  ;;  %v739_v7 = vadd.f32 %v737_v4, %v3877_v0 }
 0x35d   :  { %745 = vmax.xlane.f32.xlu1 %v744_v6 }
 0x35e   :  { %v741_v9 = vsel %vm542_vm10, %v739_v7, -inf }
 0x35f   :  { %742 = vmax.xlane.f32.xlu0 %v741_v9  ;;  %v3933_v9 = vadd.f32 %v3890_v59, %v3807_v33 }
 0x36e   :  { %765 = vrot.lane.b32.xlu1 %v3858_v55, %s3687_s17 }
 0x372   :  { %1020 = vrot.lane.b32.xlu1 %v3813_v37, %s3688_s1 }
 0x376   :  { %1018 = vrot.lane.b32.xlu1 %v3819_v41, %s3688_s1 }
 0x37a   :  { %1016 = vrot.lane.b32.xlu1 %v237_v42, %s3688_s1 }
 0x39e   :  { %547 = vmax.xlane.f32.xlu1 %v546_v8 }
 0x3af   :  { %1305 = vrot.lane.b32.xlu1 %v3819_v41, %s3689_s20 }
 0x3b3   :  { %1301 = vrot.lane.b32.xlu1 %v3816_v40, %s3689_s20 }
 0x3b7   :  { %1303 = vrot.lane.b32.xlu1 %v237_v42, %s3689_s20 }
 0x3e6   :  { %v746_v15 = vpop.xlane.xlu1 %745 }
 0x3e7   :  { %v748_v16 = vsub.f32 %v740_v5, %v746_v15  ;;  %v3944_v15 = vadd.f32 %v3892_v10, %v3807_v33  ;;  %v3959_v33 = vadd.f32 %v3847_v48, %v3810_v36  ;;  %v3963_v10 = vld [vmem:[#allocation2 + $0x60] sm:$0xff] }
 0x3e8   :  { %v743_v12 = vpop.xlane.xlu0 %742  ;;  %3377 = vmatprep.subr.mxu1 %v3963_v10 }
 0x3e9   :  { %v751_v17 = vmul.f32 1.442695, %v748_v16  ;;  %v747_v18 = vsub.f32 %v739_v7, %v743_v12 }
 0x3ea   :  { %v766_v31 = vpop.permute.xlu1 %765 }
 0x3eb   :  { %3555 = vpow2.f32 %v751_v17  ;;  %v749_v19 = vmul.f32 1.442695, %v747_v18 }
 0x3ed   :  { %3557 = vpow2.f32 %v749_v19 }
 0x3f8   :  { %v3556_v20 = vpop.eup %3555 }
 0x3f9   :  { %v756_v21 = vsel %vm542_vm10, %v3556_v20, 0.0 }
 0x3fa   :  { %v3558_v22 = vpop.eup %3557  ;;  %757 = vadd.xlane.f32.xlu0 %v756_v21 }
 0x3fb   :  { %v753_v23 = vsel %vm542_vm10, %v3558_v22, 0.0 }
 0x3fe   :  { %754 = vadd.xlane.f32.xlu0 %v753_v23 }
 0x414   :  { %767 = vrot.lane.b32.xlu0 %v3855_v53, %s3687_s17 }
 0x418   :  { %1014 = vrot.lane.b32.xlu0 %v3816_v40, %s3688_s1  ;;  %v1021_v40 = vpop.permute.xlu1 %1020 }
 0x41c   :  { %v1019_v41 = vpop.permute.xlu1 %1018 }
 0x420   :  { %v1017_v42 = vpop.permute.xlu1 %1016 }
 0x427   :  { %v548_v43 = vpop.xlane.xlu1 %547 }
 0x428   :  { %v550_v45 = vsub.f32 %v541_v14, %v548_v43  ;;  %v3940_v14 = vadd.f32 %v3852_v50, %v3810_v36 }
 0x42a   :  { %v553_v51 = vmul.f32 1.442695, %v550_v45 }
 0x42b   :  { %v1306_v5 = vpop.permute.xlu1 %1305 }
 0x437   :  { %544 = vmax.xlane.f32.xlu0 %v543_v27 }
 0x483   :  { %v758_v28 = vpop.xlane.xlu0 %757 }
 0x484   :  { %3559 = vrcp.f32 %v758_v28 }
 0x487   :  { %v755_v29 = vpop.xlane.xlu0 %754 }
 0x488   :  { %3561 = vrcp.f32 %v755_v29 }
 0x48b   :  { %v768_v30 = vpop.permute.xlu0 %767 }
 0x48c   :  { %3365 = vmatprep.subr.mxu0 %v768_v30 }
 0x48d   :  { %3366 = vmatpush3.msra.mxu0 %v768_v30 }
 0x48e   :  { %3367 = vmatprep.subr.mxu0 %v766_v31 }
 0x48f   :  { %3368 = vmatpush3.msra.mxu0 %v766_v31  ;;  %v1015_v44 = vpop.permute.xlu0 %1014 }
 0x490   :  { %3372 = vmatprep.subr.mxu0 %v3909_v32 }
 0x491   :  { %v3560_v34 = vpop.eup %3559 }
 0x492   :  { %v762_v39 = vmul.f32 %v3560_v34, %v3556_v20 }
 0x495   :  { %v3562_v35 = vpop.eup %3561 }
 0x496   :  { %v761_v38 = vmul.f32 %v3562_v35, %v3558_v22 }
 0x498   :  { %3369 = vmatprep.mubr.msk.f32.mxu0 %vm542_vm10, %v761_v38 }
 0x499   :  { %3370 = vmatmul.mubr.msk.f32.vlgmr.msra.gmra.mxu0 %vm542_vm10, %v762_v39 }
 0x49a   :  { %3373 = vmatpush3.msra.mxu0 %v3909_v32 }
 0x49b   :  { %3382 = vmatprep.subr.msk.mxu0 %vm446_vm9, %v1021_v40 }
 0x4c0   :  { %v545_v46 = vpop.xlane.xlu0 %544 }
 0x4c1   :  { %v549_v47 = vsub.f32 %v540_v26, %v545_v46 }
 0x4c3   :  { %v551_v54 = vmul.f32 1.442695, %v549_v47 }
 0x4c5   :  { %3563 = vpow2.f32 %v551_v54 }
 0x4c6   :  { %3565 = vpow2.f32 %v553_v51 }
 0x4d2   :  { %v3564_v56 = vpop.eup %3563 }
 0x4d3   :  { %v555_v58 = vsel %vm542_vm10, %v3564_v56, 0.0  ;;  %v3566_v60 = vpop.eup %3565 }
 0x4d4   :  { %556 = vadd.xlane.f32.xlu0 %v555_v58  ;;  %v558_v63 = vsel %vm542_vm10, %v3566_v60, 0.0 }
 0x4d8   :  { %559 = vadd.xlane.f32.xlu0 %v558_v63 }
 0x4ee   :  { %1307 = vrot.lane.b32.xlu0 %v3813_v37, %s3689_s20  ;;  %v1302_v37 = vpop.permute.xlu1 %1301 }
 0x4f2   :  { %v1304_v8 = vpop.permute.xlu1 %1303 }
 0x559   :  { %v3371_v2 = vpop.f32.mrf.mxu0 }
 0x55b   :  { %v843_v3 = vpop.f32.mrf.mxu0 }
 0x55c   :  { %3374 = vmatprep.mubr.msk.f32.mxu0 %vm446_vm9, %v843_v3 }
 0x55d   :  { %3375 = vmatmul.mubr.msk.f32.vlgmr.msra.gmra.mxu0 %vm446_vm9, %v3371_v2  ;;  %v557_v4 = vpop.xlane.xlu0 %556  ;;  %v3996_v2 = vrot.slane %v3870_v61, %v139_v1 }
 0x55e   :  { %3383 = vmatpush3.xpose.msk.msra.mxu0 %vm446_vm9, %v1021_v40  ;;  %3567 = vrcp.f32 %v557_v4  ;;  %3386 = vmatprep.mubr.msk.f32.mxu0 %vm446_vm9, %v1015_v44 }
 0x55f   :  { %3384 = vmatprep.subr.msk.mxu0 %vm446_vm9, %v1019_v41 }
 0x561   :  { %v560_v6 = vpop.xlane.xlu0 %559 }
 0x562   :  { %3385 = vmatpush3.xpose.msk.msra.mxu0 %vm446_vm9, %v1019_v41  ;;  %3569 = vrcp.f32 %v560_v6 }
 0x565   :  { %3387 = vmatmul.mubr.msk.f32.vlgmr.msra.gmra.mxu0 %vm446_vm9, %v1017_v42  ;;  %v1308_v7 = vpop.permute.xlu0 %1307 }
 0x566   :  { %3405 = vmatprep.mubr.msk.f32.mxu0 %vm446_vm9, %v1302_v37  ;;  %3401 = vmatprep.subr.msk.mxu0 %vm446_vm9, %v1308_v7 }
 0x567   :  { %3402 = vmatpush3.xpose.msk.msra.mxu0 %vm446_vm9, %v1308_v7 }
 0x568   :  { %3403 = vmatprep.subr.msk.mxu0 %vm446_vm9, %v1306_v5 }
 0x56b   :  { %v3568_v11 = vpop.eup %3567  ;;  %3404 = vmatpush3.xpose.msk.msra.mxu0 %vm446_vm9, %v1306_v5 }
 0x56c   :  { %3420 = vmatprep.subr.msk.mxu0 %vm446_vm9, %v3933_v9  ;;  %v563_v13 = vmul.f32 %v3568_v11, %v3564_v56 }
 0x56e   :  { %3355 = vmatprep.mubr.msk.f32.mxu1 %vm542_vm10, %v563_v13  ;;  %3406 = vmatmul.mubr.msk.f32.vlgmr.msra.gmra.mxu0 %vm446_vm9, %v1304_v8 }
 0x56f   :  { %v3570_v59 = vpop.eup %3569  ;;  %3421 = vmatpush3.xpose.msk.msra.mxu0 %vm446_vm9, %v3933_v9  ;;  %3424 = vmatprep.mubr.msk.f32.mxu0 %vm446_vm9, %v3940_v14 }
 0x570   :  { %3422 = vmatprep.subr.msk.mxu0 %vm446_vm9, %v3944_v15  ;;  %v564_v50 = vmul.f32 %v3570_v59, %v3566_v60 }
 0x572   :  { %3356 = vmatmul.mubr.msk.f32.vlgmr.msra.gmra.mxu1 %vm542_vm10, %v564_v50 }
 0x573   :  { %3423 = vmatpush3.xpose.msk.msra.mxu0 %vm446_vm9, %v3944_v15  ;;  %3378 = vmatpush3.msra.mxu1 %v3963_v10 }
 0x576   :  { %3425 = vmatmul.mubr.msk.f32.vlgmr.msra.gmra.mxu0 %vm446_vm9, %v3959_v33 }
 0x61d   :  { %v3967_v16 = vpop.f32.mrf.mxu0 }
 0x61f   :  { %v3969_v12 = vpop.f32.mrf.mxu0 }
 0x625   :  { %v3388_v17 = vpop.f32.mrf.mxu0 }
 0x626   :  { %v1106_v18 = vmul.f32 0.35355338, %v3388_v17 }
 0x627   :  { %v1096_v19 = vpop.f32.mrf.mxu0 }
 0x628   :  { %v1105_v20 = vmul.f32 0.35355338, %v1096_v19  ;;  %v1108_v36 = vadd.f32 %v1106_v18, %v3877_v0 }
 0x62a   :  { %v1112_v48 = vsel %vm542_vm10, %v1108_v36, -inf  ;;  %v1107_v21 = vadd.f32 %v1105_v20, %v3877_v0 }
 0x62b   :  { %1113 = vmax.xlane.f32.xlu1 %v1112_v48 }
 0x62c   :  { %v1109_v22 = vsel %vm542_vm10, %v1107_v21, -inf }
 0x62d   :  { %1110 = vmax.xlane.f32.xlu0 %v1109_v22 }
 0x62e   :  { %v3407_v25 = vpop.f32.mrf.mxu0 }
 0x62f   :  { %v1393_v51 = vmul.f32 0.35355338, %v3407_v25 }
 0x630   :  { %v1383_v26 = vpop.f32.mrf.mxu0 }
 0x631   :  { %v1392_v27 = vmul.f32 0.35355338, %v1383_v26  ;;  %v1395_v54 = vadd.f32 %v1393_v51, %v3877_v0 }
 0x632   :  { %v3357_v23 = vpop.f32.mrf.mxu1 }
 0x633   :  { %v1394_v28 = vadd.f32 %v1392_v27, %v3877_v0  ;;  %v1399_v56 = vsel %vm542_vm10, %v1395_v54, -inf }
 0x634   :  { %v637_v24 = vpop.f32.mrf.mxu1 }
 0x635   :  { %3379 = vmatprep.mubr.msk.f32.mxu1 %vm446_vm9, %v637_v24  ;;  %v1396_v29 = vsel %vm542_vm10, %v1394_v28, -inf }
 0x636   :  { %3380 = vmatmul.mubr.msk.f32.vlgmr.msra.gmra.mxu1 %vm446_vm9, %v3357_v23  ;;  %v3426_v63 = vpop.f32.mrf.mxu0 }
 0x637   :  { %v1676_v3 = vmul.f32 0.35355338, %v3426_v63 }
 0x639   :  { %v1682_v0 = vadd.f32 %v3996_v2, %v1676_v3  ;;  %v4037_v3 = vadd.f32 %v3872_v62, %v3850_v49 }
 0x63b   :  { %v1686_v4 = vsel %vm542_vm10, %v1682_v0, -inf }
 0x63c   :  { %1131 = vrot.lane.b32.xlu1 %v3858_v55, %s3688_s1 }
 0x660   :  { %1397 = vmax.xlane.f32.xlu1 %v1396_v29 }
 0x6b4   :  { %v1114_v30 = vpop.xlane.xlu1 %1113 }
 0x6b5   :  { %v1116_v31 = vsub.f32 %v1108_v36, %v1114_v30 }
 0x6b6   :  { %v1111_v34 = vpop.xlane.xlu0 %1110 }
 0x6b7   :  { %v1119_v35 = vmul.f32 1.442695, %v1116_v31  ;;  %v1115_v38 = vsub.f32 %v1107_v21, %v1111_v34  ;;  %v1666_v21 = vpop.f32.mrf.mxu0 }
 0x6b8   :  { %v1132_v44 = vpop.permute.xlu1 %1131  ;;  %v1675_v22 = vmul.f32 0.35355338, %v1666_v21 }
 0x6b9   :  { %3571 = vpow2.f32 %v1119_v35  ;;  %v1117_v39 = vmul.f32 1.442695, %v1115_v38  ;;  %v4024_v38 = vld [vmem:[#allocation2 + $0x78] sm:$0xff] }
 0x6ba   :  { %v1681_v23 = vadd.f32 %v3996_v2, %v1675_v22 }
 0x6bb   :  { %3573 = vpow2.f32 %v1117_v39 }
 0x6bc   :  { %v1683_v24 = vsel %vm542_vm10, %v1681_v23, -inf }
 0x6c6   :  { %v3572_v40 = vpop.eup %3571 }
 0x6c7   :  { %v1124_v41 = vsel %vm542_vm10, %v3572_v40, 0.0 }
 0x6c8   :  { %v3574_v42 = vpop.eup %3573  ;;  %1125 = vadd.xlane.f32.xlu0 %v1124_v41 }
 0x6c9   :  { %v1121_v43 = vsel %vm542_vm10, %v3574_v42, 0.0 }
 0x6cc   :  { %1122 = vadd.xlane.f32.xlu0 %v1121_v43 }
 0x6e2   :  { %1133 = vrot.lane.b32.xlu0 %v3855_v53, %s3688_s1 }
 0x6e9   :  { %v1398_v45 = vpop.xlane.xlu1 %1397 }
 0x6ea   :  { %v1402_v46 = vsub.f32 %v1394_v28, %v1398_v45 }
 0x6ec   :  { %v1404_v47 = vmul.f32 1.442695, %v1402_v46 }
 0x6ee   :  { %3575 = vpow2.f32 %v1404_v47 }
 0x6fb   :  { %v3987_v58 = vpop.eup %3575 }
 0x6fc   :  { %v1408_v60 = vsel %vm542_vm10, %v3987_v58, 0.0 }
 0x701   :  { %1400 = vmax.xlane.f32.xlu0 %v1399_v56 }
 0x705   :  { %1409 = vadd.xlane.f32.xlu0 %v1408_v60 }
 0x71b   :  { %1420 = vrot.lane.b32.xlu0 %v3855_v53, %s3689_s20  ;;  %v4000_v53 = vld [vmem:[#allocation2 + $0x70] sm:$0xff] }
 0x73a   :  { %1687 = vmax.xlane.f32.xlu0 %v1686_v4 }
 0x751   :  { %v1126_v5 = vpop.xlane.xlu0 %1125 }
 0x752   :  { %3577 = vrcp.f32 %v1126_v5 }
 0x755   :  { %v1123_v6 = vpop.xlane.xlu0 %1122 }
 0x756   :  { %3579 = vrcp.f32 %v1123_v6 }
 0x759   :  { %v1134_v37 = vpop.permute.xlu0 %1133 }
 0x75a   :  { %3389 = vmatprep.subr.mxu1 %v1134_v37 }
 0x75b   :  { %3390 = vmatpush3.msra.mxu1 %v1134_v37 }
 0x75c   :  { %3391 = vmatprep.subr.mxu1 %v1132_v44 }
 0x75d   :  { %3392 = vmatpush3.msra.mxu1 %v1132_v44 }
 0x75e   :  { %3396 = vmatprep.subr.mxu1 %v4000_v53 }
 0x75f   :  { %v3578_v1 = vpop.eup %3577 }
 0x760   :  { %v1130_v11 = vmul.f32 %v3578_v1, %v3572_v40 }
 0x763   :  { %v3580_v61 = vpop.eup %3579 }
 0x764   :  { %v1129_v7 = vmul.f32 %v3580_v61, %v3574_v42 }
 0x766   :  { %3393 = vmatprep.mubr.msk.f32.mxu1 %vm542_vm10, %v1129_v7 }
 0x767   :  { %3394 = vmatmul.mubr.msk.f32.vlgmr.msra.gmra.mxu1 %vm542_vm10, %v1130_v11 }
 0x768   :  { %3397 = vmatpush3.msra.mxu1 %v4000_v53 }
 0x78a   :  { %v1401_v13 = vpop.xlane.xlu0 %1400 }
 0x78b   :  { %v1403_v8 = vsub.f32 %v1395_v54, %v1401_v13 }
 0x78d   :  { %v1406_v59 = vmul.f32 1.442695, %v1403_v8 }
 0x78e   :  { %v1410_v50 = vpop.xlane.xlu0 %1409 }
 0x78f   :  { %3581 = vpow2.f32 %v1406_v59 }
 0x792   :  { %v1421_v17 = vpop.permute.xlu0 %1420 }
 0x793   :  { %3408 = vmatprep.subr.mxu1 %v1421_v17 }
 0x79c   :  { %v3582_v18 = vpop.eup %3581 }
 0x79d   :  { %v1411_v19 = vsel %vm542_vm10, %v3582_v18, 0.0 }
 0x79e   :  { %1412 = vadd.xlane.f32.xlu1 %v1411_v19 }
 0x7af   :  { %1418 = vrot.lane.b32.xlu1 %v3858_v55, %s3689_s20  ;;  %v3381_v55 = vpop.f32.mrf.mxu1 }
 0x7b0   :  { %v1011_v46 = vadd.f32 %v3381_v55, %v3967_v16 }
 0x7b1   :  { %v4018_v27 = vpop.f32.mrf.mxu1 }
 0x7b2   :  { %v1006_v1 = vadd.f32 %v4018_v27, %v3969_v12 }
 0x7c3   :  { %v1688_v20 = vpop.xlane.xlu0 %1687 }
 0x7c4   :  { %v1690_v36 = vsub.f32 %v1682_v0, %v1688_v20 }
 0x7c6   :  { %v1693_v48 = vmul.f32 1.442695, %v1690_v36 }
 0x7c8   :  { %3583 = vpow2.f32 %v1693_v48 }
 0x7c9   :  { %3585 = vrcp.f32 %v1410_v50 }
 0x7d3   :  { %1684 = vmax.xlane.f32.xlu1 %v1683_v24 }
 0x7d5   :  { %v3584_v25 = vpop.eup %3583 }
 0x7d6   :  { %v1698_v26 = vsel %vm542_vm10, %v3584_v25, 0.0  ;;  %v3586_v28 = vpop.eup %3585 }
 0x7d7   :  { %1699 = vadd.xlane.f32.xlu1 %v1698_v26  ;;  %v1416_v34 = vmul.f32 %v3586_v28, %v3987_v58 }
 0x7e8   :  { %1790 = vrot.lane.b32.xlu1 %v3944_v15, %s3687_s17 }
 0x7ec   :  { %1786 = vrot.lane.b32.xlu1 %v3940_v14, %s3687_s17 }
 0x7f0   :  { %1788 = vrot.lane.b32.xlu1 %v3959_v33, %s3687_s17 }
 0x827   :  { %v3395_v29 = vpop.f32.mrf.mxu1  ;;  %v1413_v30 = vpop.xlane.xlu1 %1412 }
 0x828   :  { %3587 = vrcp.f32 %v1413_v30 }
 0x829   :  { %v1209_v31 = vpop.f32.mrf.mxu1 }
 0x82a   :  { %3398 = vmatprep.mubr.msk.f32.mxu1 %vm446_vm9, %v1209_v31 }
 0x82b   :  { %3399 = vmatmul.mubr.msk.f32.vlgmr.msra.gmra.mxu1 %vm446_vm9, %v3395_v29  ;;  %v1419_v35 = vpop.permute.xlu1 %1418 }
 0x82c   :  { %3409 = vmatpush3.msra.mxu1 %v1421_v17  ;;  %3412 = vmatprep.mubr.msk.f32.mxu1 %vm542_vm10, %v1416_v34 }
 0x82d   :  { %3410 = vmatprep.subr.mxu1 %v1419_v35 }
 0x82e   :  { %3411 = vmatpush3.msra.mxu1 %v1419_v35 }
 0x82f   :  { %3415 = vmatprep.subr.mxu1 %v4024_v38 }
 0x835   :  { %v3588_v39 = vpop.eup %3587 }
 0x836   :  { %v1417_v40 = vmul.f32 %v3588_v39, %v3582_v18 }
 0x838   :  { %3413 = vmatmul.mubr.msk.f32.vlgmr.msra.gmra.mxu1 %vm542_vm10, %v1417_v40 }
 0x839   :  { %3416 = vmatpush3.msra.mxu1 %v4024_v38 }
 0x83a   :  { %3427 = vmatprep.subr.mxu1 %v3863_v57 }
 0x85c   :  { %v1685_v41 = vpop.xlane.xlu1 %1684 }
 0x85d   :  { %v1689_v42 = vsub.f32 %v1681_v23, %v1685_v41 }
 0x85f   :  { %v1691_v43 = vmul.f32 1.442695, %v1689_v42 }
 0x860   :  { %v1700_v54 = vpop.xlane.xlu1 %1699 }
 0x861   :  { %3589 = vpow2.f32 %v1691_v43 }
 0x862   :  { %3591 = vrcp.f32 %v1700_v54 }
 0x864   :  { %v1791_v0 = vpop.permute.xlu1 %1790 }
 0x868   :  { %v1787_v49 = vpop.permute.xlu1 %1786 }
 0x86c   :  { %v1789_v62 = vpop.permute.xlu1 %1788 }
 0x86e   :  { %v3590_v44 = vpop.eup %3589 }
 0x86f   :  { %v1695_v45 = vsel %vm542_vm10, %v3590_v44, 0.0  ;;  %v3592_v4 = vpop.eup %3591 }
 0x870   :  { %1696 = vadd.xlane.f32.xlu0 %v1695_v45  ;;  %v1704_v37 = vmul.f32 %v3592_v4, %v3584_v25 }
 0x886   :  { %1792 = vrot.lane.b32.xlu0 %v3933_v9, %s3687_s17 }
 0x8eb   :  { %v3400_v47 = vpop.f32.mrf.mxu1 }
 0x8ec   :  { %v1300_v51 = vadd.f32 %v3400_v47, %v1011_v46 }
 0x8ed   :  { %v1290_v56 = vpop.f32.mrf.mxu1 }
 0x8ee   :  { %v1299_v7 = vadd.f32 %v1290_v56, %v1006_v1 }
 0x8f8   :  { %v3414_v58 = vpop.f32.mrf.mxu1 }
 0x8f9   :  { %v1697_v60 = vpop.xlane.xlu0 %1696 }
 0x8fa   :  { %3593 = vrcp.f32 %v1697_v60  ;;  %v1496_v63 = vpop.f32.mrf.mxu1 }
 0x8fb   :  { %3417 = vmatprep.mubr.msk.f32.mxu1 %vm446_vm9, %v1496_v63 }
 0x8fc   :  { %3418 = vmatmul.mubr.msk.f32.vlgmr.msra.gmra.mxu1 %vm446_vm9, %v3414_v58 }
 0x8fd   :  { %3428 = vmatpush3.msra.mxu1 %v3863_v57  ;;  %v1793_v16 = vpop.permute.xlu0 %1792 }
 0x8fe   :  { %3429 = vmatprep.subr.mxu1 %v4037_v3 }
 0x8ff   :  { %3430 = vmatpush3.msra.mxu1 %v4037_v3 }
 0x900   :  { %3434 = vmatprep.subr.msk.mxu1 %vm446_vm9, %v1793_v16 }
 0x907   :  { %v3594_v5 = vpop.eup %3593 }
 0x908   :  { %v1703_v6 = vmul.f32 %v3594_v5, %v3590_v44 }
 0x90a   :  { %3431 = vmatprep.mubr.msk.f32.mxu1 %vm542_vm10, %v1703_v6 }
 0x90b   :  { %3432 = vmatmul.mubr.msk.f32.vlgmr.msra.gmra.mxu1 %vm542_vm10, %v1704_v37 }
 0x90c   :  { %3435 = vmatpush3.xpose.msk.msra.mxu1 %vm446_vm9, %v1793_v16  ;;  %3438 = vmatprep.mubr.msk.f32.mxu1 %vm446_vm9, %v1787_v49 }
 0x90d   :  { %3436 = vmatprep.subr.msk.mxu1 %vm446_vm9, %v1791_v0 }
 0x910   :  { %3437 = vmatpush3.xpose.msk.msra.mxu1 %vm446_vm9, %v1791_v0 }
 0x911   :  { %3453 = vmatprep.subr.mxu1 %v3963_v10 }
 0x913   :  { %3439 = vmatmul.mubr.msk.f32.vlgmr.msra.gmra.mxu1 %vm446_vm9, %v1789_v62 }
 0x914   :  { %3454 = vmatpush3.msra.mxu1 %v3963_v10 }
 0x9bc   :  { %v3419_v61 = vpop.f32.mrf.mxu1 }
 0x9bd   :  { %v4055_v11 = vadd.f32 %v3419_v61, %v1300_v51 }
 0x9be   :  { %v1577_v13 = vpop.f32.mrf.mxu1 }
 0x9bf   :  { %v4057_v8 = vadd.f32 %v1577_v13, %v1299_v7 }
 0x9cb   :  { %v3433_v59 = vpop.f32.mrf.mxu1 }
 0x9cd   :  { %v1777_v50 = vpop.f32.mrf.mxu1 }
 0x9ce   :  { %3455 = vmatprep.mubr.msk.f32.mxu1 %vm446_vm9, %v1777_v50 }
 0x9cf   :  { %3456 = vmatmul.mubr.msk.f32.vlgmr.msra.gmra.mxu1 %vm446_vm9, %v3433_v59 }
 0x9d3   :  { %v3440_v17 = vpop.f32.mrf.mxu1 }
 0x9d4   :  { %v1878_v18 = vmul.f32 0.35355338, %v3440_v17 }
 0x9d5   :  { %v1868_v19 = vpop.f32.mrf.mxu1 }
 0x9d6   :  { %v1877_v10 = vmul.f32 0.35355338, %v1868_v19  ;;  %v1880_v20 = vadd.f32 %v1878_v18, %v3996_v2 }
 0x9d8   :  { %v1884_v12 = vsel %vm542_vm10, %v1880_v20, -inf  ;;  %v1879_v36 = vadd.f32 %v1877_v10, %v3996_v2 }
 0x9d9   :  { %1885 = vmax.xlane.f32.xlu1 %v1884_v12 }
 0x9da   :  { %v1881_v48 = vsel %vm542_vm10, %v1879_v36, -inf }
 0x9db   :  { %1882 = vmax.xlane.f32.xlu0 %v1881_v48 }
 0x9ea   :  { %1905 = vrot.lane.b32.xlu1 %v4037_v3, %s3687_s17 }
 0x9ee   :  { %2160 = vrot.lane.b32.xlu1 %v3933_v9, %s3688_s1 }
 0x9f2   :  { %2158 = vrot.lane.b32.xlu1 %v3944_v15, %s3688_s1 }
 0x9f6   :  { %2156 = vrot.lane.b32.xlu1 %v3959_v33, %s3688_s1 }
 0x9fa   :  { %2445 = vrot.lane.b32.xlu1 %v3944_v15, %s3689_s20 }
 0x9fe   :  { %2443 = vrot.lane.b32.xlu1 %v3959_v33, %s3689_s20 }
 0xa62   :  { %v1886_v21 = vpop.xlane.xlu1 %1885 }
 0xa63   :  { %v1888_v22 = vsub.f32 %v1880_v20, %v1886_v21 }
 0xa64   :  { %v1883_v23 = vpop.xlane.xlu0 %1882 }
 0xa65   :  { %v1891_v24 = vmul.f32 1.442695, %v1888_v22  ;;  %v1887_v25 = vsub.f32 %v1879_v36, %v1883_v23 }
 0xa66   :  { %v1906_v31 = vpop.permute.xlu1 %1905 }
 0xa67   :  { %3595 = vpow2.f32 %v1891_v24  ;;  %v1889_v26 = vmul.f32 1.442695, %v1887_v25 }
 0xa69   :  { %3597 = vpow2.f32 %v1889_v26 }
 0xa74   :  { %v3596_v55 = vpop.eup %3595 }
 0xa75   :  { %v1896_v27 = vsel %vm542_vm10, %v3596_v55, 0.0 }
 0xa76   :  { %v3598_v28 = vpop.eup %3597  ;;  %1897 = vadd.xlane.f32.xlu0 %v1896_v27  ;;  %v4130_v27 = vld [vmem:[%s4287_s3] sm:$0xff] }
 0xa77   :  { %v1893_v29 = vsel %vm542_vm10, %v3598_v28, 0.0 }
 0xa7a   :  { %1894 = vadd.xlane.f32.xlu0 %v1893_v29  ;;  %v3636_v29 = vld [vmem:[%s4284_s0 + $0x8] sm:$0xff] }
 0xa90   :  { %1907 = vrot.lane.b32.xlu0 %v3863_v57, %s3687_s17 }
 0xa94   :  { %2154 = vrot.lane.b32.xlu0 %v3940_v14, %s3688_s1 }
 0xa98   :  { %2447 = vrot.lane.b32.xlu0 %v3933_v9, %s3689_s20  ;;  %v2161_v9 = vpop.permute.xlu1 %2160 }
 0xa9c   :  { %2441 = vrot.lane.b32.xlu0 %v3940_v14, %s3689_s20  ;;  %v2159_v42 = vpop.permute.xlu1 %2158 }
 0xaa0   :  { %v2157_v45 = vpop.permute.xlu1 %2156 }
 0xaa4   :  { %v2446_v46 = vpop.permute.xlu1 %2445 }
 0xaa8   :  { %v2444_v47 = vpop.permute.xlu1 %2443 }
 0xaff   :  { %v1898_v15 = vpop.xlane.xlu0 %1897 }
 0xb00   :  { %3599 = vrcp.f32 %v1898_v15 }
 0xb03   :  { %v1895_v33 = vpop.xlane.xlu0 %1894 }
 0xb04   :  { %3601 = vrcp.f32 %v1895_v33 }
 0xb07   :  { %v1908_v30 = vpop.permute.xlu0 %1907 }
 0xb08   :  { %3441 = vmatprep.subr.mxu0 %v1908_v30 }
 0xb09   :  { %3442 = vmatpush3.msra.mxu0 %v1908_v30 }
 0xb0a   :  { %3443 = vmatprep.subr.mxu0 %v1906_v31 }
 0xb0b   :  { %3444 = vmatpush3.msra.mxu0 %v1906_v31  ;;  %v2155_v14 = vpop.permute.xlu0 %2154 }
 0xb0c   :  { %3448 = vmatprep.subr.mxu0 %v3909_v32 }
 0xb0d   :  { %v3600_v34 = vpop.eup %3599 }
 0xb0e   :  { %v1902_v40 = vmul.f32 %v3600_v34, %v3596_v55  ;;  %v2730_v55 = vsub.s32 5, %v3773_v52 }
 0xb0f   :  { %v2448_v44 = vpop.permute.xlu0 %2447 }
 0xb11   :  { %v3602_v35 = vpop.eup %3601 }
 0xb12   :  { %v1901_v39 = vmul.f32 %v3602_v35, %v3598_v28  ;;  %v4133_v28 = vrot.slane %v4130_v27, %v2730_v55 }
 0xb14   :  { %3445 = vmatprep.mubr.msk.f32.mxu0 %vm542_vm10, %v1901_v39 }
 0xb15   :  { %3446 = vmatmul.mubr.msk.f32.vlgmr.msra.gmra.mxu0 %vm542_vm10, %v1902_v40 }
 0xb16   :  { %3449 = vmatpush3.msra.mxu0 %v3909_v32  ;;  %v2442_v32 = vpop.permute.xlu0 %2441 }
 0xb17   :  { %3458 = vmatprep.subr.msk.mxu0 %vm446_vm9, %v2161_v9 }
 0xbd5   :  { %v3447_v41 = vpop.f32.mrf.mxu0 }
 0xbd7   :  { %v1983_v43 = vpop.f32.mrf.mxu0 }
 0xbd8   :  { %3450 = vmatprep.mubr.msk.f32.mxu0 %vm446_vm9, %v1983_v43 }
 0xbd9   :  { %3451 = vmatmul.mubr.msk.f32.vlgmr.msra.gmra.mxu0 %vm446_vm9, %v3447_v41 }
 0xbda   :  { %3459 = vmatpush3.xpose.msk.msra.mxu0 %vm446_vm9, %v2161_v9  ;;  %3462 = vmatprep.mubr.msk.f32.mxu0 %vm446_vm9, %v2155_v14 }
 0xbdb   :  { %3460 = vmatprep.subr.msk.mxu0 %vm446_vm9, %v2159_v42 }
 0xbde   :  { %3461 = vmatpush3.xpose.msk.msra.mxu0 %vm446_vm9, %v2159_v42 }
 0xbdf   :  { %3477 = vmatprep.subr.msk.mxu0 %vm446_vm9, %v2448_v44 }
 0xbe1   :  { %3463 = vmatmul.mubr.msk.f32.vlgmr.msra.gmra.mxu0 %vm446_vm9, %v2157_v45  ;;  %v2732_v45 = vadd.f32 %v4133_v28, %v4057_v8 }
 0xbe2   :  { %3478 = vmatpush3.xpose.msk.msra.mxu0 %vm446_vm9, %v2448_v44  ;;  %3481 = vmatprep.mubr.msk.f32.mxu0 %vm446_vm9, %v2442_v32 }
 0xbe3   :  { %3479 = vmatprep.subr.msk.mxu0 %vm446_vm9, %v2446_v46 }
 0xbe6   :  { %3480 = vmatpush3.xpose.msk.msra.mxu0 %vm446_vm9, %v2446_v46 }
 0xbe9   :  { %3482 = vmatmul.mubr.msk.f32.vlgmr.msra.gmra.mxu0 %vm446_vm9, %v2444_v47  ;;  %v3457_v47 = vpop.f32.mrf.mxu1 }
 0xc99   :  { %v4105_v51 = vpop.f32.mrf.mxu0 }
 0xc9b   :  { %v4107_v54 = vpop.f32.mrf.mxu0 }
 0xca1   :  { %v3464_v56 = vpop.f32.mrf.mxu0 }
 0xca2   :  { %v2246_v58 = vmul.f32 0.35355338, %v3464_v56  ;;  %v2145_v56 = vpop.f32.mrf.mxu1 }
 0xca3   :  { %v2236_v60 = vpop.f32.mrf.mxu0 }
 0xca4   :  { %v2245_v63 = vmul.f32 0.35355338, %v2236_v60  ;;  %v2248_v16 = vadd.f32 %v2246_v58, %v3996_v2 }
 0xca6   :  { %v2252_v0 = vsel %vm542_vm10, %v2248_v16, -inf  ;;  %v2247_v4 = vadd.f32 %v2245_v63, %v3996_v2 }
 0xca7   :  { %2253 = vmax.xlane.f32.xlu1 %v2252_v0 }
 0xca8   :  { %v2249_v5 = vsel %vm542_vm10, %v2247_v4, -inf }
 0xca9   :  { %2250 = vmax.xlane.f32.xlu0 %v2249_v5  ;;  %v3483_v6 = vpop.f32.mrf.mxu0  ;;  %v2151_v5 = vadd.f32 %v3457_v47, %v4105_v51 }
 0xcaa   :  { %v2533_v22 = vmul.f32 0.35355338, %v3483_v6 }
 0xcab   :  { %v2523_v37 = vpop.f32.mrf.mxu0 }
 0xcac   :  { %v2532_v49 = vmul.f32 0.35355338, %v2523_v37  ;;  %v2535_v23 = vadd.f32 %v2533_v22, %v3996_v2  ;;  %v2146_v37 = vadd.f32 %v2145_v56, %v4107_v54 }
 0xcae   :  { %v2534_v62 = vadd.f32 %v2532_v49, %v3996_v2  ;;  %v2539_v24 = vsel %vm542_vm10, %v2535_v23, -inf  ;;  %v2733_v2 = vadd.f32 %v4133_v28, %v4055_v11 }
 0xcb0   :  { %v2536_v1 = vsel %vm542_vm10, %v2534_v62, -inf  ;;  %v4140_v15 = vadd.f32 %v3636_v29, %v2733_v2  ;;  %v2839_v2 = vld [vmem:[%s4288_s4 + $0x18] sm:$0xff]  ;;  %v2838_v29 = vld [vmem:[%s4288_s4 + $0x10] sm:$0xff] }
 0xcb1   :  { %3496 = vmatprep.subr.mxu0 %v2839_v2 }
 0xcb2   :  { %3497 = vmatpush3.msra.mxu0 %v2839_v2 }
 0xcb3   :  { %3498 = vmatprep.subr.mxu0 %v2838_v29 }
 0xcb4   :  { %3499 = vmatpush3.msra.mxu0 %v2838_v29 }
 0xcb8   :  { %2271 = vrot.lane.b32.xlu1 %v4037_v3, %s3688_s1 }
 0xcdc   :  { %2537 = vmax.xlane.f32.xlu1 %v2536_v1 }
 0xd30   :  { %v2254_v61 = vpop.xlane.xlu1 %2253 }
 0xd31   :  { %v2256_v7 = vsub.f32 %v2248_v16, %v2254_v61 }
 0xd32   :  { %v2251_v13 = vpop.xlane.xlu0 %2250 }
 0xd33   :  { %v2259_v59 = vmul.f32 1.442695, %v2256_v7  ;;  %v2255_v50 = vsub.f32 %v2247_v4, %v2251_v13 }
 0xd34   :  { %v2272_v12 = vpop.permute.xlu1 %2271 }
 0xd35   :  { %3603 = vpow2.f32 %v2259_v59  ;;  %v2257_v17 = vmul.f32 1.442695, %v2255_v50 }
 0xd37   :  { %3605 = vpow2.f32 %v2257_v17 }
 0xd42   :  { %v3604_v18 = vpop.eup %3603 }
 0xd43   :  { %v2264_v19 = vsel %vm542_vm10, %v3604_v18, 0.0 }
 0xd44   :  { %v3606_v10 = vpop.eup %3605  ;;  %2265 = vadd.xlane.f32.xlu0 %v2264_v19 }
 0xd45   :  { %v2261_v20 = vsel %vm542_vm10, %v3606_v10, 0.0 }
 0xd48   :  { %2262 = vadd.xlane.f32.xlu0 %v2261_v20 }
 0xd5e   :  { %2273 = vrot.lane.b32.xlu0 %v3863_v57, %s3688_s1 }
 0xd65   :  { %v2538_v36 = vpop.xlane.xlu1 %2537 }
 0xd66   :  { %v2542_v48 = vsub.f32 %v2534_v62, %v2538_v36 }
 0xd68   :  { %v2544_v21 = vmul.f32 1.442695, %v2542_v48 }
 0xd6a   :  { %3607 = vpow2.f32 %v2544_v21  ;;  %v3639_v21 = vld [vmem:[%s4284_s0 + $0x10] sm:$0xff] }
 0xd77   :  { %v3608_v25 = vpop.eup %3607 }
 0xd78   :  { %v2548_v26 = vsel %vm542_vm10, %v3608_v25, 0.0 }
 0xd7d   :  { %2540 = vmax.xlane.f32.xlu0 %v2539_v24 }
 0xd81   :  { %2549 = vadd.xlane.f32.xlu0 %v2548_v26 }
 0xd97   :  { %2560 = vrot.lane.b32.xlu0 %v3863_v57, %s3689_s20  ;;  %v2743_v57 = vsel %vm47_vm0, %v4140_v15, 0.0 }
 0xdb6   :  { %2744 = vadd.xlane.f32.xlu0 %v2743_v57  ;;  %v2837_v57 = vld [vmem:[%s4288_s4 + $0x8] sm:$0xff] }
 0xdb7   :  { %3500 = vmatprep.subr.mxu0 %v2837_v57 }
 0xdb8   :  { %3501 = vmatpush3.msra.mxu0 %v2837_v57 }
 0xdcd   :  { %v2266_v33 = vpop.xlane.xlu0 %2265 }
 0xdce   :  { %3609 = vrcp.f32 %v2266_v33  ;;  %v2836_v33 = vld [vmem:[%s4288_s4] sm:$0xff] }
 0xdcf   :  { %3502 = vmatprep.subr.mxu0 %v2836_v33 }
 0xdd0   :  { %3503 = vmatpush3.msra.mxu0 %v2836_v33 }
 0xdd1   :  { %v2263_v30 = vpop.xlane.xlu0 %2262 }
 0xdd2   :  { %3611 = vrcp.f32 %v2263_v30 }
 0xdd5   :  { %v2274_v31 = vpop.permute.xlu0 %2273 }
 0xdd6   :  { %3465 = vmatprep.subr.mxu1 %v2274_v31 }
 0xdd7   :  { %3466 = vmatpush3.msra.mxu1 %v2274_v31 }
 0xdd8   :  { %3467 = vmatprep.subr.mxu1 %v2272_v12 }
 0xdd9   :  { %3468 = vmatpush3.msra.mxu1 %v2272_v12  ;;  %v3638_v12 = vld [vmem:[%s4284_s0 + $0x18] sm:$0xff] }
 0xdda   :  { %3472 = vmatprep.subr.mxu1 %v4000_v53 }
 0xddb   :  { %v3610_v11 = vpop.eup %3609 }
 0xddc   :  { %v2270_v39 = vmul.f32 %v3610_v11, %v3604_v18 }
 0xddf   :  { %v3612_v34 = vpop.eup %3611 }
 0xde0   :  { %v2269_v35 = vmul.f32 %v3612_v34, %v3606_v10 }
 0xde2   :  { %3469 = vmatprep.mubr.msk.f32.mxu1 %vm542_vm10, %v2269_v35 }
 0xde3   :  { %3470 = vmatmul.mubr.msk.f32.vlgmr.msra.gmra.mxu1 %vm542_vm10, %v2270_v39 }
 0xde4   :  { %3473 = vmatpush3.msra.mxu1 %v4000_v53  ;;  %v3637_v53 = vld [vmem:[%s4284_s0] sm:$0xff] }
 0xde5   :  { %v4156_v32 = vadd.f32 %v3637_v53, %v2732_v45 }
 0xde7   :  { %v2740_v46 = vsel %vm47_vm0, %v4156_v32, 0.0 }
 0xe06   :  { %v2541_v40 = vpop.xlane.xlu0 %2540 }
 0xe07   :  { %v2543_v9 = vsub.f32 %v2535_v23, %v2541_v40 }
 0xe09   :  { %v2546_v14 = vmul.f32 1.442695, %v2543_v9 }
 0xe0a   :  { %v2550_v41 = vpop.xlane.xlu0 %2549 }
 0xe0b   :  { %3613 = vpow2.f32 %v2546_v14 }
 0xe0c   :  { %3615 = vrcp.f32 %v2550_v41 }
 0xe0e   :  { %v2561_v42 = vpop.permute.xlu0 %2560 }
 0xe0f   :  { %3484 = vmatprep.subr.mxu1 %v2561_v42 }
 0xe18   :  { %v3614_v43 = vpop.eup %3613 }
 0xe19   :  { %v2551_v44 = vsel %vm542_vm10, %v3614_v43, 0.0  ;;  %v3616_v58 = vpop.eup %3615 }
 0xe1a   :  { %2552 = vadd.xlane.f32.xlu1 %v2551_v44  ;;  %v2556_v8 = vmul.f32 %v3616_v58, %v3608_v25 }
 0xe2b   :  { %2558 = vrot.lane.b32.xlu1 %v4037_v3, %s3689_s20 }
 0xe3f   :  { %v2745_v13 = vpop.xlane.xlu0 %2744 }
 0xe40   :  { %v2753_v50 = vmul.f32 0.03125, %v2745_v13 }
 0xe42   :  { %v4171_v51 = vsub.f32 %v4140_v15, %v2753_v50 }
 0xe44   :  { %v2761_v24 = vmul.f32 %v4171_v51, %v4171_v51 }
 0xe46   :  { %v2767_v55 = vsel %vm47_vm0, %v2761_v24, 0.0 }
 0xe4f   :  { %2741 = vadd.xlane.f32.xlu1 %v2740_v46 }
 0xea3   :  { %v3471_v60 = vpop.f32.mrf.mxu1  ;;  %v2553_v63 = vpop.xlane.xlu1 %2552 }
 0xea4   :  { %3617 = vrcp.f32 %v2553_v63 }
 0xea5   :  { %v2349_v3 = vpop.f32.mrf.mxu1 }
 0xea6   :  { %3474 = vmatprep.mubr.msk.f32.mxu1 %vm446_vm9, %v2349_v3 }
 0xea7   :  { %3475 = vmatmul.mubr.msk.f32.vlgmr.msra.gmra.mxu1 %vm446_vm9, %v3471_v60  ;;  %v2559_v16 = vpop.permute.xlu1 %2558 }
 0xea8   :  { %3485 = vmatpush3.msra.mxu1 %v2561_v42  ;;  %3488 = vmatprep.mubr.msk.f32.mxu1 %vm542_vm10, %v2556_v8 }
 0xea9   :  { %3486 = vmatprep.subr.mxu1 %v2559_v16 }
 0xeaa   :  { %3487 = vmatpush3.msra.mxu1 %v2559_v16 }
 0xeab   :  { %3491 = vmatprep.subr.mxu1 %v4024_v38 }
 0xeb1   :  { %v3618_v0 = vpop.eup %3617 }
 0xeb2   :  { %v2557_v4 = vmul.f32 %v3618_v0, %v3614_v43 }
 0xeb4   :  { %3489 = vmatmul.mubr.msk.f32.vlgmr.msra.gmra.mxu1 %vm542_vm10, %v2557_v4 }
 0xeb5   :  { %3492 = vmatpush3.msra.mxu1 %v4024_v38 }
 0xed8   :  { %v2742_v59 = vpop.xlane.xlu1 %2741 }
 0xed9   :  { %v2752_v18 = vmul.f32 0.03125, %v2742_v59 }
 0xedb   :  { %v4175_v20 = vsub.f32 %v4156_v32, %v2752_v18  ;;  %v2954_v18 = vld [vmem:[%s4290_s6 + $0x30] sm:$0xff] }
 0xedd   :  { %v2760_v26 = vmul.f32 %v4175_v20, %v4175_v20 }
 0xf67   :  { %v3476_v6 = vpop.f32.mrf.mxu1 }
 0xf68   :  { %v2440_v49 = vadd.f32 %v3476_v6, %v2151_v5  ;;  %v2818_v5 = vsub.s32 6, %v3773_v52 }
 0xf69   :  { %v2430_v62 = vpop.f32.mrf.mxu1 }
 0xf6a   :  { %v2439_v1 = vadd.f32 %v2430_v62, %v2146_v37  ;;  %v4224_v6 = vrot.slane %v4130_v27, %v2818_v5  ;;  %v2830_v37 = vsub.s32 7, %v3773_v52  ;;  %v2955_v52 = vld [vmem:[%s4290_s6 + $0x38] sm:$0xff] }
 0xf6b   :  { %3510 = vmatprep.subr.mxu1 %v2955_v52 }
 0xf6c   :  { %v2821_v62 = vmul.f32 %v4224_v6, %v4171_v51  ;;  %v2950_v51 = vld [vmem:[%s4290_s6 + $0x10] sm:$0xff] }
 0xf74   :  { %v3490_v61 = vpop.f32.mrf.mxu1 }
 0xf76   :  { %v2636_v7 = vpop.f32.mrf.mxu1 }
 0xf77   :  { %3493 = vmatprep.mubr.msk.f32.mxu1 %vm446_vm9, %v2636_v7  ;;  %v2831_v7 = vrot.slane %v4130_v27, %v2830_v37  ;;  %v2953_v27 = vld [vmem:[%s4290_s6 + $0x28] sm:$0xff] }
 0xf78   :  { %3494 = vmatmul.mubr.msk.f32.vlgmr.msra.gmra.mxu1 %vm446_vm9, %v3490_v61 }
 0xf79   :  { %3511 = vmatpush3.msra.mxu1 %v2955_v52 }
 0xf7a   :  { %3512 = vmatprep.subr.mxu1 %v2954_v18 }
 0xf7b   :  { %3513 = vmatpush3.msra.mxu1 %v2954_v18 }
 0xf7c   :  { %3514 = vmatprep.subr.mxu1 %v2953_v27 }
 0xf7d   :  { %3515 = vmatpush3.msra.mxu1 %v2953_v27 }
0x1038   :  { %v3495_v17 = vpop.f32.mrf.mxu1 }
0x1039   :  { %v2727_v38 = vadd.f32 %v3495_v17, %v2440_v49 }
0x103a   :  { %v2717_v19 = vpop.f32.mrf.mxu1 }
0x103b   :  { %v2735_v54 = vadd.f32 %v4133_v28, %v2727_v38  ;;  %v2726_v10 = vadd.f32 %v2717_v19, %v2439_v1  ;;  %v2820_v1 = vmul.f32 %v4224_v6, %v4175_v20  ;;  %v2952_v38 = vld [vmem:[%s4290_s6 + $0x20] sm:$0xff]  ;;  %v2951_v19 = vld [vmem:[%s4290_s6 + $0x18] sm:$0xff] }
0x103c   :  { %3516 = vmatprep.subr.mxu1 %v2952_v38 }
0x103d   :  { %v4180_v36 = vadd.f32 %v3638_v12, %v2735_v54  ;;  %v2734_v48 = vadd.f32 %v4133_v28, %v2726_v10  ;;  %v2764_v28 = vsel %vm47_vm0, %v2760_v26, 0.0  ;;  %3517 = vmatpush3.msra.mxu1 %v2952_v38  ;;  %v2949_v54 = vld [vmem:[%s4290_s6 + $0x8] sm:$0xff]  ;;  %v2948_v10 = vld [vmem:[%s4290_s6] sm:$0xff] }
0x103e   :  { %3518 = vmatprep.subr.mxu1 %v2951_v19 }
0x103f   :  { %v4186_v22 = vadd.f32 %v3639_v21, %v2734_v48  ;;  %v2749_v23 = vsel %vm47_vm0, %v4180_v36, 0.0  ;;  %3519 = vmatpush3.msra.mxu1 %v2951_v19 }
0x1040   :  { %2750 = vadd.xlane.f32.xlu1 %v2749_v23  ;;  %3520 = vmatprep.subr.mxu1 %v2950_v51 }
0x1041   :  { %v2746_v25 = vsel %vm47_vm0, %v4186_v22, 0.0  ;;  %3521 = vmatpush3.msra.mxu1 %v2950_v51 }
0x1042   :  { %2747 = vadd.xlane.f32.xlu0 %v2746_v25  ;;  %3522 = vmatprep.subr.mxu1 %v2949_v54 }
0x1043   :  { %3523 = vmatpush3.msra.mxu1 %v2949_v54 }
0x1044   :  { %2768 = vadd.xlane.f32.xlu1 %v2767_v55  ;;  %3524 = vmatprep.subr.mxu1 %v2948_v10 }
0x1045   :  { %3525 = vmatpush3.msra.mxu1 %v2948_v10 }
0x1046   :  { %2765 = vadd.xlane.f32.xlu0 %v2764_v28 }
0x10c9   :  { %v2751_v30 = vpop.xlane.xlu1 %2750 }
0x10ca   :  { %v2755_v31 = vmul.f32 0.03125, %v2751_v30 }
0x10cb   :  { %v2748_v11 = vpop.xlane.xlu0 %2747 }
0x10cc   :  { %v4211_v34 = vsub.f32 %v4180_v36, %v2755_v31  ;;  %v2754_v35 = vmul.f32 0.03125, %v2748_v11 }
0x10cd   :  { %v2769_v39 = vpop.xlane.xlu1 %2768 }
0x10ce   :  { %v4214_v40 = vsub.f32 %v4186_v22, %v2754_v35  ;;  %v2777_v9 = vmul.f32 0.032258064, %v2769_v39  ;;  %v2763_v14 = vmul.f32 %v4211_v34, %v4211_v34  ;;  %v2823_v35 = vmul.f32 %v4224_v6, %v4211_v34 }
0x10cf   :  { %v2766_v41 = vpop.xlane.xlu0 %2765 }
0x10d0   :  { %3619 = vrsqrt.f32 %v2777_v9  ;;  %v2776_v42 = vmul.f32 0.032258064, %v2766_v41  ;;  %v2773_v43 = vsel %vm47_vm0, %v2763_v14, 0.0  ;;  %v2762_v44 = vmul.f32 %v4214_v40, %v4214_v40 }
0x10d1   :  { %2774 = vadd.xlane.f32.xlu1 %v2773_v43  ;;  %vm2789_vm11 = vcmp.eq.f32.partialorder %v2777_v9, inf  ;;  %v2792_v47 = vand.u32 2147483648, %v2777_v9  ;;  %vm2791_vm12 = vcmp.eq.f32.partialorder %v2777_v9, 0.0  ;;  %v2822_v39 = vmul.f32 %v4224_v6, %v4214_v40 }
0x10d2   :  { %3621 = vrsqrt.f32 %v2776_v42  ;;  %v2770_v45 = vsel %vm47_vm0, %v2762_v44, 0.0  ;;  %vm2782_vm13 = vcmp.eq.f32.partialorder %v2776_v42, inf  ;;  %v2785_v8 = vand.u32 2147483648, %v2776_v42  ;;  %v3160_v44 = vld [vmem:[%s4289_s5] ss:$0 sm:$0xff]  ;;  %s3690_s5 = smov [#allocation5]  }
0x10d3   :  { %2771 = vadd.xlane.f32.xlu0 %v2770_v45  ;;  %vm2784_vm14 = vcmp.eq.f32.partialorder %v2776_v42, 0.0  ;;  %s3071_s11 = sshll.u32 %s3690_s5, 4  ;;  %s3072_s11 = int_to_ptr.vmem [resolvable:$true] %s3071_s11 }
0x10d4   :  { %p3665_p6 = scmp.lt.s32.totalorder %s3072_s11, %s3072_s11 }
0x10dd   :  { %v3620_v53 = vpop.eup %3619 }
0x10de   :  { %v2788_v46 = vmul.f32 %v3620_v53, %v2777_v9 }
0x10df   :  { %v3622_v56 = vpop.eup %3621 }
0x10e0   :  { %v2790_v58 = vsel %vm2789_vm11, %v2777_v9, %v2788_v46  ;;  %v2781_v63 = vmul.f32 %v3622_v56, %v2776_v42 }
0x10e1   :  { %v2793_v60 = vsel %vm2791_vm12, %v2792_v47, %v2790_v58 }
0x10e2   :  { %v2809_v3 = vadd.f32 1e-06, %v2793_v60  ;;  %v2783_v16 = vsel %vm2782_vm13, %v2776_v42, %v2781_v63 }
0x10e3   :  { %v2786_v0 = vsel %vm2784_vm14, %v2785_v8, %v2783_v16  ;;  %v3165_v16 = vld [vmem:[%s4287_s3 + $0x8] ss:$0 sm:$0xff]  ;;  %s3660_s3 = scalar_lea.vmem %s3072_s11, 512 }
0x10e4   :  { %3623 = vrcp.f32 %v2809_v3  ;;  %v2808_v4 = vadd.f32 1e-06, %v2786_v0  ;;  %p3661_p5 = scmp.ne.s32.totalorder %s3072_s11, %s3660_s3  ;;  %p3666_p7 = scmp.lt.s32.totalorder %s3660_s3, %s3660_s3 }
0x10e6   :  { %3625 = vrcp.f32 %v2808_v4  ;;  %p3667_p8 = por %p3666_p7, %p3665_p6 }
0x10e8   :  { %p3668_p9 = pnand %p3667_p8, %p3661_p5 }
0x10f1   :  { %v3624_v49 = vpop.eup %3623 }
0x10f2   :  { %v2825_v13 = vmul.f32 %v3624_v49, %v2821_v62 }
0x10f3   :  { %v3626_v61 = vpop.eup %3625 }
0x10f4   :  { %v2824_v59 = vmul.f32 %v3626_v61, %v2820_v1  ;;  %v2833_v17 = vadd.f32 %v2831_v7, %v2825_v13 }
0x10f6   :  { %v2832_v50 = vadd.f32 %v2831_v7, %v2824_v59 }
0x10f8   :  { %3504 = vmatprep.mubr.msk.f32.mxu0 %vm47_vm0, %v2832_v50 }
0x10f9   :  { %3505 = vmatmul.mubr.msk.f32.vlgmr.msra.gmra.mxu0 %vm47_vm0, %v2833_v17 }
0x115a   :  { %v2775_v20 = vpop.xlane.xlu1 %2774 }
0x115b   :  { %v2779_v12 = vmul.f32 0.032258064, %v2775_v20 }
0x115c   :  { %v2772_v48 = vpop.xlane.xlu0 %2771 }
0x115d   :  { %3627 = vrsqrt.f32 %v2779_v12  ;;  %v2778_v21 = vmul.f32 0.032258064, %v2772_v48  ;;  %vm2803_vm15 = vcmp.eq.f32.partialorder %v2779_v12, inf  ;;  %v2806_v25 = vand.u32 2147483648, %v2779_v12 }
0x115e   :  { %vm2805_vm1 = vcmp.eq.f32.partialorder %v2779_v12, 0.0 }
0x115f   :  { %3629 = vrsqrt.f32 %v2778_v21  ;;  %vm2796_vm2 = vcmp.eq.f32.partialorder %v2778_v21, inf  ;;  %v2799_v57 = vand.u32 2147483648, %v2778_v21  ;;  %vm2798_vm3 = vcmp.eq.f32.partialorder %v2778_v21, 0.0 }
0x116a   :  { %v3628_v23 = vpop.eup %3627 }
0x116b   :  { %v2802_v24 = vmul.f32 %v3628_v23, %v2779_v12 }
0x116c   :  { %v3630_v26 = vpop.eup %3629 }
0x116d   :  { %v2804_v55 = vsel %vm2803_vm15, %v2779_v12, %v2802_v24  ;;  %v2795_v2 = vmul.f32 %v3630_v26, %v2778_v21 }
0x116e   :  { %v2807_v28 = vsel %vm2805_vm1, %v2806_v25, %v2804_v55 }
0x116f   :  { %v2811_v29 = vadd.f32 1e-06, %v2807_v28  ;;  %v2797_v33 = vsel %vm2796_vm2, %v2778_v21, %v2795_v2 }
0x1170   :  { %v2800_v30 = vsel %vm2798_vm3, %v2799_v57, %v2797_v33 }
0x1171   :  { %3631 = vrcp.f32 %v2811_v29  ;;  %v2810_v31 = vadd.f32 1e-06, %v2800_v30 }
0x1173   :  { %3633 = vrcp.f32 %v2810_v31 }
0x117e   :  { %v3632_v11 = vpop.eup %3631 }
0x117f   :  { %v2827_v14 = vmul.f32 %v3632_v11, %v2823_v35 }
0x1180   :  { %v3634_v9 = vpop.eup %3633 }
0x1181   :  { %v2826_v41 = vmul.f32 %v3634_v9, %v2822_v39  ;;  %v2835_v43 = vadd.f32 %v2831_v7, %v2827_v14 }
0x1183   :  { %v2834_v42 = vadd.f32 %v2831_v7, %v2826_v41 }
0x1185   :  { %3507 = vmatprep.mubr.msk.f32.mxu0 %vm47_vm0, %v2834_v42 }
0x1186   :  { %3508 = vmatmul.mubr.msk.f32.gmra.mxu0 %vm47_vm0, %v2835_v43 }
0x11b9   :  { %v3506_v45 = vpop.f32.mrf.mxu0 }
0x11ba   :  { %v2931_v53 = vadd.f32 %v3506_v45, %v3160_v44 }
0x11bb   :  { %v2925_v46 = vpop.f32.mrf.mxu0 }
0x11bc   :  { %v2926_v34 = vadd.f32 %v3160_v44, %v2925_v46  ;;  %v2945_v40 = vmax.f32 %v2931_v53, 0.0 }
0x11be   :  { %v2944_v47 = vmax.f32 %v2926_v34, 0.0 }
0x11c0   :  { %3526 = vmatprep.mubr.msk.f32.mxu1 %vm2960_vm4, %v2944_v47 }
0x11c1   :  { %3527 = vmatmul.mubr.msk.f32.vlgmr.msra.gmra.mxu1 %vm2960_vm4, %v2945_v40 }
0x1246   :  { %v3509_v56 = vpop.f32.mrf.mxu0 }
0x1247   :  { %v2941_v58 = vadd.f32 %v3509_v56, %v3160_v44 }
0x1248   :  { %v2935_v60 = vpop.f32.mrf.mxu0 }
0x1249   :  { %v2936_v63 = vadd.f32 %v3160_v44, %v2935_v60  ;;  %v2947_v8 = vmax.f32 %v2941_v58, 0.0 }
0x124b   :  { %v2946_v3 = vmax.f32 %v2936_v63, 0.0 }
0x124d   :  { %3529 = vmatprep.mubr.msk.f32.mxu1 %vm2960_vm4, %v2946_v3 }
0x124e   :  { %3530 = vmatmul.mubr.msk.f32.gmra.mxu1 %vm2960_vm4, %v2947_v8 }
0x1281   :  { %v3528_v0 = vpop.f32.mrf.mxu1 }
0x1282   :  { %v3045_v4 = vadd.f32 %v3528_v0, %v3165_v16 }
0x1283   :  { %v3039_v5 = vpop.f32.mrf.mxu1 }
0x1284   :  { %v3059_v6 = vadd.f32 %v3045_v4, %v4140_v15  ;;  %v3040_v37 = vadd.f32 %v3165_v16, %v3039_v5 }
0x1286   :  { %3063 = vst.msk [vmem:[#allocation5 + $0x8] sm:$0xff] %vm47_vm0, %v3059_v6  ;;  %v3058_v49 = vadd.f32 %v3040_v37, %v4156_v32 }
0x1288   :  { %3062 = vst.msk [vmem:[#allocation5] sm:$0xff] %vm47_vm0, %v3058_v49 }
0x130e   :  { %v3531_v62 = vpop.f32.mrf.mxu1 }
0x130f   :  { %v3055_v1 = vadd.f32 %v3531_v62, %v3165_v16 }
0x1310   :  { %v3049_v61 = vpop.f32.mrf.mxu1 }
0x1311   :  { %v3061_v7 = vadd.f32 %v3055_v1, %v4180_v36  ;;  %v3050_v13 = vadd.f32 %v3165_v16, %v3049_v61 }
0x1313   :  { %3065 = vst.msk [vmem:[#allocation5 + $0x18] sm:$0xff] %vm47_vm0, %v3061_v7  ;;  %v3060_v59 = vadd.f32 %v3050_v13, %v4186_v22 }
0x1315   :  { %3064 = vst.msk [vmem:[#allocation5 + $0x10] sm:$0xff] %vm47_vm0, %v3060_v59 }
0x1316   :  { %3671 = shalt.err (!%p3668_p9)
}
0x1317   :  { %3077 = dma.vmem_to_hbm [thread:$0]  %s3072_s11, 512, %s4291_s7, [#allocation4], %s3685_s27, %s3685_s27, %s3686_s28  }
0x1318   :  { %3682 = dma.done.wait [#allocation4], 512  }
0x1319   :  { %3683 = vsyncadd [#allocation4], 4294966784 }
0x131a   :  { %3081 = vsyncpa [#allocation3], 1 }
0x131b   :  { %3082 = vsyncpa [#allocation4], 1 }

</bundles_post_ra>
